<compile_context>
chip_gen: v5e
topology: v5e:2x2
jax: 0.10.0
libtpu: 0.0.40
codegen_flags: <defaults>
</compile_context>

<pallas_src>
import jax
import jax.numpy as jnp
from jax import lax
from jax.experimental import pallas as pl
from jax.experimental.pallas import tpu as pltpu


# Tap offsets; enumeration order k = (oy + 1) * 3 + (ox + 1) == dy * 3 + dx
# matches the packed per-tap weight layout produced in the wrapper.
_TAP_OFFSETS = tuple((oy, ox) for oy in (-1, 0, 1) for ox in (-1, 0, 1))


def _make_kernel(H, W):
    HW = H * W

    def kernel(x_ref, w1_ref, t1_ref, w2_ref, t2_ref, out_ref):
        # x_ref:   (1, C, H*W)   input slab: channels on sublanes, pixels on lanes
        # w1_ref:  (9, Cmid, C)  conv1 per-tap weights, BN1 scale folded
        # t1_ref:  (Cmid, 1)     folded BN1 shift (conv1 bias folded), f32
        # w2_ref:  (9, C, Cmid)  conv2 per-tap weights, BN2 scale folded
        # t2_ref:  (C, 1)        folded BN2 shift (conv2 bias folded), f32
        # out_ref: (1, C, H*W)   f32 output slab
        x = x_ref[0]                                   # (C, HW)
        cdt = x.dtype

        # Border-validity masks over the flattened pixel (lane) axis, computed
        # once per grid step (VPU-only, a single vreg each).
        pos = lax.broadcasted_iota(jnp.int32, (1, HW), 1)
        col = pos % W
        row_lo = (pos >= W).astype(cdt)                # valid when tap reads y - 1
        row_hi = (pos < (H - 1) * W).astype(cdt)       # valid when tap reads y + 1
        col_lo = (col > 0).astype(cdt)                 # valid when tap reads x - 1
        col_hi = (col < W - 1).astype(cdt)             # valid when tap reads x + 1

        def tap(a, oy, ox):
            """Zero-padded 3x3 tap: tap(a)[c, y*W + x] = a[c, y+oy, x+ox] or 0."""
            off = oy * W + ox
            # roll(a, -off)[p] == a[p + off]; wrapped lanes are always masked below.
            t = a if off == 0 else pltpu.roll(a, shift=(-off) % HW, axis=1)
            m = None
            if oy == -1:
                m = row_lo
            elif oy == 1:
                m = row_hi
            if ox == -1:
                m = col_lo if m is None else m * col_lo
            elif ox == 1:
                m = col_hi if m is None else m * col_hi
            return t if m is None else t * m

        def conv3x3(a, w_ref):
            # sum_k  W_k (Cout, Cin) @ tap_k(a) (Cin, HW)  ->  (Cout, HW) in f32.
            acc = None
            for k, (oy, ox) in enumerate(_TAP_OFFSETS):
                d = jnp.dot(w_ref[k], tap(a, oy, ox),
                            preferred_element_type=jnp.float32)
                acc = d if acc is None else acc + d
            return acc

        # conv1 -> BN1 shift (scale folded into w1) -> ReLU
        mid = jnp.maximum(conv3x3(x, w1_ref) + t1_ref[...], 0.0).astype(cdt)
        # conv2 -> BN2 shift -> residual add
        y = conv3x3(mid, w2_ref) + t2_ref[...]
        out_ref[0] = (x.astype(jnp.float32) + y).astype(out_ref.dtype)

    return kernel


def bottleneck2d_forward(x_nchw, params, *, eps=1e-5,
                         compute_dtype=jnp.float32):
    """x + BN2(Conv3x3(ReLU(BN1(Conv3x3(x))))), BatchNorm in eval mode."""
    (w1, b1, g1, be1, m1, v1, w2, b2, g2, be2, m2, v2) = params
    N, C, H, W = x_nchw.shape
    Cmid = w1.shape[-1]
    HW = H * W

    # Fold conv bias + BatchNorm (eval) into a per-channel scale (folded into
    # the weights) and a per-channel shift:  bn(conv(x) + b) = conv(x)*s + t.
    s1 = g1 / jnp.sqrt(v1 + eps)
    t1 = (b1 - m1) * s1 + be1
    s2 = g2 / jnp.sqrt(v2 + eps)
    t2 = (b2 - m2) * s2 + be2

    # Per-tap weights, (9, Cout, Cin) layout with k = dy*3 + dx, scale folded:
    #   w1p[k, co, ci] = w1[dy, dx, ci, co] * s1[co]
    w1p = jnp.transpose(w1 * s1, (0, 1, 3, 2)).reshape(9, Cmid, C)
    w2p = jnp.transpose(w2 * s2, (0, 1, 3, 2)).reshape(9, C, Cmid)
    t1p = t1.reshape(Cmid, 1).astype(jnp.float32)
    t2p = t2.reshape(C, 1).astype(jnp.float32)

    # NCHW kept; only a free reshape so each grid step reads/writes one
    # contiguous, lane-dense (1, C, H*W) slab (H*W = 256 lanes here).
    xk = x_nchw.reshape(N, C, HW).astype(compute_dtype)
    w1p = w1p.astype(compute_dtype)
    w2p = w2p.astype(compute_dtype)

    out = pl.pallas_call(
        _make_kernel(H, W),
        out_shape=jax.ShapeDtypeStruct((N, C, HW), jnp.float32),
        grid_spec=pltpu.PrefetchScalarGridSpec(
            num_scalar_prefetch=0,
            grid=(N,),            # 2-wide "parallel" axis keeps both v7x TCs busy
            in_specs=[
                pl.BlockSpec((1, C, HW), lambda n: (n, 0, 0)),
                pl.BlockSpec((9, Cmid, C), lambda n: (0, 0, 0)),
                pl.BlockSpec((Cmid, 1), lambda n: (0, 0)),
                pl.BlockSpec((9, C, Cmid), lambda n: (0, 0, 0)),
                pl.BlockSpec((C, 1), lambda n: (0, 0)),
            ],
            out_specs=pl.BlockSpec((1, C, HW), lambda n: (n, 0, 0)),
        ),
        compiler_params=pltpu.CompilerParams(
            dimension_semantics=("parallel",),
            vmem_limit_bytes=32 * 1024 * 1024,
        ),
    )(xk, w1p, t1p, w2p, t2p)

    return out.reshape(N, C, H, W)


def _reference(x_nchw, params, *, eps=1e-5):
    (w1, b1, g1, be1, m1, v1, w2, b2, g2, be2, m2, v2) = params
    x = jnp.transpose(x_nchw, (0, 2, 3, 1)).astype(jnp.float32)
    dn = ('NHWC', 'HWIO', 'NHWC')
    y = lax.conv_general_dilated(x, w1, (1, 1), 'SAME', dimension_numbers=dn,
                                 precision=lax.Precision.HIGHEST) + b1
    y = (y - m1) / jnp.sqrt(v1 + eps) * g1 + be1
    y = jnp.maximum(y, 0.0)
    y = lax.conv_general_dilated(y, w2, (1, 1), 'SAME', dimension_numbers=dn,
                                 precision=lax.Precision.HIGHEST) + b2
    y = (y - m2) / jnp.sqrt(v2 + eps) * g2 + be2
    return jnp.transpose(x + y, (0, 3, 1, 2))


if __name__ == "__main__":
    key = jax.random.PRNGKey(0)
    N, C, H, W = 2, 4, 16, 16
    expand = 5
    Cmid = expand * C  # 20

    ks = jax.random.split(key, 12)
    x = jax.random.normal(ks[0], (N, C, H, W), jnp.float32)

    w1 = 0.1 * jax.random.normal(ks[1], (3, 3, C, Cmid), jnp.float32)
    b1 = 0.1 * jax.random.normal(ks[2], (Cmid,), jnp.float32)
    g1 = 1.0 + 0.1 * jax.random.normal(ks[3], (Cmid,), jnp.float32)
    be1 = 0.1 * jax.random.normal(ks[4], (Cmid,), jnp.float32)
    m1 = 0.1 * jax.random.normal(ks[5], (Cmid,), jnp.float32)
    v1 = 1.0 + 0.5 * jax.random.uniform(ks[6], (Cmid,), jnp.float32)

    w2 = 0.1 * jax.random.normal(ks[7], (3, 3, Cmid, C), jnp.float32)
    b2 = 0.1 * jax.random.normal(ks[8], (C,), jnp.float32)
    g2 = 1.0 + 0.1 * jax.random.normal(ks[9], (C,), jnp.float32)
    be2 = 0.1 * jax.random.normal(ks[10], (C,), jnp.float32)
    m2 = 0.1 * jax.random.normal(ks[11], (C,), jnp.float32)
    v2 = jnp.ones((C,), jnp.float32) * 1.3

    params = (w1, b1, g1, be1, m1, v1, w2, b2, g2, be2, m2, v2)

    out = jax.block_until_ready(bottleneck2d_forward(x, params))
    ref = jax.block_until_ready(_reference(x, params))

    assert out.shape == (N, C, H, W), out.shape
    if not jnp.allclose(out, ref, atol=2e-3, rtol=2e-3):
        raise AssertionError("Pallas kernel does not match JAX reference")
    print("KERNEL_OK")
</pallas_src>

<mosaic_0001>
module attributes {stable_mosaic.version = 11 : i64} {
  func.func @kernel(%arg0: i32, %arg1: memref<1x4x256xf32, #tpu.memory_space<vmem>>, %arg2: memref<9x20x4xf32, #tpu.memory_space<vmem>>, %arg3: memref<20x1xf32, #tpu.memory_space<vmem>>, %arg4: memref<9x4x20xf32, #tpu.memory_space<vmem>>, %arg5: memref<4x1xf32, #tpu.memory_space<vmem>>, %arg6: memref<1x4x256xf32, #tpu.memory_space<vmem>>) attributes {dimension_semantics = [#tpu.dimension_semantics<parallel>], iteration_bounds = array<i64: 2>, scalar_prefetch = 0 : i64, scratch_operands = 0 : i64, tpu.core_type = #tpu.core_type<tc>, window_params = [{transform_indices = @transform_0, window_bounds = array<i64: 1, 4, 256>}, {pipeline_mode = #tpu.pipeline_mode<synchronous>, transform_indices = @transform_1, window_bounds = array<i64: 9, 20, 4>}, {pipeline_mode = #tpu.pipeline_mode<synchronous>, transform_indices = @transform_2, window_bounds = array<i64: 20, 1>}, {pipeline_mode = #tpu.pipeline_mode<synchronous>, transform_indices = @transform_3, window_bounds = array<i64: 9, 4, 20>}, {pipeline_mode = #tpu.pipeline_mode<synchronous>, transform_indices = @transform_4, window_bounds = array<i64: 4, 1>}, {transform_indices = @transform_5, window_bounds = array<i64: 1, 4, 256>}]} {
    %c0 = arith.constant 0 : index
    %c0_0 = arith.constant 0 : index
    %c0_1 = arith.constant 0 : index
    %0 = vector.load %arg1[%c0, %c0_0, %c0_1] : memref<1x4x256xf32, #tpu.memory_space<vmem>>, vector<1x4x256xf32>
    %1 = vector.shape_cast %0 : vector<1x4x256xf32> to vector<4x256xf32>
    %2 = tpu.iota {dimensions = array<i32: 1>} : vector<1x256xi32>
    %c16_i32 = arith.constant 16 : i32
    %c0_i32 = arith.constant 0 : i32
    %3 = arith.cmpi eq, %c16_i32, %c0_i32 : i32
    %c1_i32 = arith.constant 1 : i32
    %4 = arith.select %3, %c1_i32, %c16_i32 : i32
    %5 = vector.broadcast %4 : i32 to vector<1x256xi32>
    %6 = arith.remsi %2, %5 : vector<1x256xi32>
    %c0_i32_2 = arith.constant 0 : i32
    %7 = vector.broadcast %c0_i32_2 : i32 to vector<1x256xi32>
    %8 = arith.cmpi ne, %6, %7 : vector<1x256xi32>
    %c0_i32_3 = arith.constant 0 : i32
    %9 = vector.broadcast %c0_i32_3 : i32 to vector<1x256xi32>
    %10 = arith.cmpi slt, %6, %9 : vector<1x256xi32>
    %c0_i32_4 = arith.constant 0 : i32
    %11 = arith.cmpi slt, %4, %c0_i32_4 : i32
    %12 = vector.broadcast %11 : i1 to vector<1x256xi1>
    %13 = vector.broadcast %12 : vector<1x256xi1> to vector<1x256xi1>
    %14 = arith.xori %10, %13 : vector<1x256xi1>
    %15 = arith.andi %14, %8 : vector<1x256xi1>
    %16 = vector.broadcast %4 : i32 to vector<1x256xi32>
    %17 = arith.addi %6, %16 : vector<1x256xi32>
    %18 = arith.select %15, %17, %6 : vector<1x256xi1>, vector<1x256xi32>
    %c16_i32_5 = arith.constant 16 : i32
    %19 = vector.broadcast %c16_i32_5 : i32 to vector<1x256xi32>
    %20 = arith.cmpi sge, %2, %19 : vector<1x256xi32>
    %21 = arith.extui %20 : vector<1x256xi1> to vector<1x256xi32>
    %22 = arith.sitofp %21 : vector<1x256xi32> to vector<1x256xf32>
    %c240_i32 = arith.constant 240 : i32
    %23 = vector.broadcast %c240_i32 : i32 to vector<1x256xi32>
    %24 = arith.cmpi slt, %2, %23 : vector<1x256xi32>
    %25 = arith.extui %24 : vector<1x256xi1> to vector<1x256xi32>
    %26 = arith.sitofp %25 : vector<1x256xi32> to vector<1x256xf32>
    %c0_i32_6 = arith.constant 0 : i32
    %27 = vector.broadcast %c0_i32_6 : i32 to vector<1x256xi32>
    %28 = arith.cmpi sgt, %18, %27 : vector<1x256xi32>
    %29 = arith.extui %28 : vector<1x256xi1> to vector<1x256xi32>
    %30 = arith.sitofp %29 : vector<1x256xi32> to vector<1x256xf32>
    %c15_i32 = arith.constant 15 : i32
    %31 = vector.broadcast %c15_i32 : i32 to vector<1x256xi32>
    %32 = arith.cmpi slt, %18, %31 : vector<1x256xi32>
    %33 = arith.extui %32 : vector<1x256xi1> to vector<1x256xi32>
    %34 = arith.sitofp %33 : vector<1x256xi32> to vector<1x256xf32>
    %c0_7 = arith.constant 0 : index
    %c0_8 = arith.constant 0 : index
    %c0_9 = arith.constant 0 : index
    %35 = vector.load %arg2[%c0_7, %c0_8, %c0_9] : memref<9x20x4xf32, #tpu.memory_space<vmem>>, vector<1x20x4xf32>
    %36 = vector.shape_cast %35 : vector<1x20x4xf32> to vector<20x4xf32>
    %c17_i32 = arith.constant 17 : i32
    %37 = tpu.dynamic_rotate %1 by %c17_i32 dim 1 : vector<4x256xf32>, i32 -> vector<4x256xf32>
    %38 = arith.mulf %22, %30 : vector<1x256xf32>
    %39 = vector.broadcast %38 : vector<1x256xf32> to vector<4x256xf32>
    %40 = arith.mulf %37, %39 : vector<4x256xf32>
    %cst = arith.constant dense<0.000000e+00> : vector<20x256xf32>
    %41 = tpu.matmul %36, %40, %cst {dimension_numbers = #tpu.dot_dimension_numbers<[1], [0], [0], [1], [0, 0, 1, 1], [], []>} : vector<20x4xf32>, vector<4x256xf32>, vector<20x256xf32> -> vector<20x256xf32>
    %c1 = arith.constant 1 : index
    %c0_10 = arith.constant 0 : index
    %c0_11 = arith.constant 0 : index
    %42 = vector.load %arg2[%c1, %c0_10, %c0_11] : memref<9x20x4xf32, #tpu.memory_space<vmem>>, vector<1x20x4xf32>
    %43 = vector.shape_cast %42 : vector<1x20x4xf32> to vector<20x4xf32>
    %c16_i32_12 = arith.constant 16 : i32
    %44 = tpu.dynamic_rotate %1 by %c16_i32_12 dim 1 : vector<4x256xf32>, i32 -> vector<4x256xf32>
    %45 = vector.broadcast %22 : vector<1x256xf32> to vector<4x256xf32>
    %46 = arith.mulf %44, %45 : vector<4x256xf32>
    %cst_13 = arith.constant dense<0.000000e+00> : vector<20x256xf32>
    %47 = tpu.matmul %43, %46, %cst_13 {dimension_numbers = #tpu.dot_dimension_numbers<[1], [0], [0], [1], [0, 0, 1, 1], [], []>} : vector<20x4xf32>, vector<4x256xf32>, vector<20x256xf32> -> vector<20x256xf32>
    %48 = arith.addf %41, %47 : vector<20x256xf32>
    %c2 = arith.constant 2 : index
    %c0_14 = arith.constant 0 : index
    %c0_15 = arith.constant 0 : index
    %49 = vector.load %arg2[%c2, %c0_14, %c0_15] : memref<9x20x4xf32, #tpu.memory_space<vmem>>, vector<1x20x4xf32>
    %50 = vector.shape_cast %49 : vector<1x20x4xf32> to vector<20x4xf32>
    %c15_i32_16 = arith.constant 15 : i32
    %51 = tpu.dynamic_rotate %1 by %c15_i32_16 dim 1 : vector<4x256xf32>, i32 -> vector<4x256xf32>
    %52 = arith.mulf %22, %34 : vector<1x256xf32>
    %53 = vector.broadcast %52 : vector<1x256xf32> to vector<4x256xf32>
    %54 = arith.mulf %51, %53 : vector<4x256xf32>
    %cst_17 = arith.constant dense<0.000000e+00> : vector<20x256xf32>
    %55 = tpu.matmul %50, %54, %cst_17 {dimension_numbers = #tpu.dot_dimension_numbers<[1], [0], [0], [1], [0, 0, 1, 1], [], []>} : vector<20x4xf32>, vector<4x256xf32>, vector<20x256xf32> -> vector<20x256xf32>
    %56 = arith.addf %48, %55 : vector<20x256xf32>
    %c3 = arith.constant 3 : index
    %c0_18 = arith.constant 0 : index
    %c0_19 = arith.constant 0 : index
    %57 = vector.load %arg2[%c3, %c0_18, %c0_19] : memref<9x20x4xf32, #tpu.memory_space<vmem>>, vector<1x20x4xf32>
    %58 = vector.shape_cast %57 : vector<1x20x4xf32> to vector<20x4xf32>
    %c1_i32_20 = arith.constant 1 : i32
    %59 = tpu.dynamic_rotate %1 by %c1_i32_20 dim 1 : vector<4x256xf32>, i32 -> vector<4x256xf32>
    %60 = vector.broadcast %30 : vector<1x256xf32> to vector<4x256xf32>
    %61 = arith.mulf %59, %60 : vector<4x256xf32>
    %cst_21 = arith.constant dense<0.000000e+00> : vector<20x256xf32>
    %62 = tpu.matmul %58, %61, %cst_21 {dimension_numbers = #tpu.dot_dimension_numbers<[1], [0], [0], [1], [0, 0, 1, 1], [], []>} : vector<20x4xf32>, vector<4x256xf32>, vector<20x256xf32> -> vector<20x256xf32>
    %63 = arith.addf %56, %62 : vector<20x256xf32>
    %c4 = arith.constant 4 : index
    %c0_22 = arith.constant 0 : index
    %c0_23 = arith.constant 0 : index
    %64 = vector.load %arg2[%c4, %c0_22, %c0_23] : memref<9x20x4xf32, #tpu.memory_space<vmem>>, vector<1x20x4xf32>
    %65 = vector.shape_cast %64 : vector<1x20x4xf32> to vector<20x4xf32>
    %cst_24 = arith.constant dense<0.000000e+00> : vector<20x256xf32>
    %66 = tpu.matmul %65, %1, %cst_24 {dimension_numbers = #tpu.dot_dimension_numbers<[1], [0], [0], [1], [0, 0, 1, 1], [], []>} : vector<20x4xf32>, vector<4x256xf32>, vector<20x256xf32> -> vector<20x256xf32>
    %67 = arith.addf %63, %66 : vector<20x256xf32>
    %c5 = arith.constant 5 : index
    %c0_25 = arith.constant 0 : index
    %c0_26 = arith.constant 0 : index
    %68 = vector.load %arg2[%c5, %c0_25, %c0_26] : memref<9x20x4xf32, #tpu.memory_space<vmem>>, vector<1x20x4xf32>
    %69 = vector.shape_cast %68 : vector<1x20x4xf32> to vector<20x4xf32>
    %c255_i32 = arith.constant 255 : i32
    %70 = tpu.dynamic_rotate %1 by %c255_i32 dim 1 : vector<4x256xf32>, i32 -> vector<4x256xf32>
    %71 = vector.broadcast %34 : vector<1x256xf32> to vector<4x256xf32>
    %72 = arith.mulf %70, %71 : vector<4x256xf32>
    %cst_27 = arith.constant dense<0.000000e+00> : vector<20x256xf32>
    %73 = tpu.matmul %69, %72, %cst_27 {dimension_numbers = #tpu.dot_dimension_numbers<[1], [0], [0], [1], [0, 0, 1, 1], [], []>} : vector<20x4xf32>, vector<4x256xf32>, vector<20x256xf32> -> vector<20x256xf32>
    %74 = arith.addf %67, %73 : vector<20x256xf32>
    %c6 = arith.constant 6 : index
    %c0_28 = arith.constant 0 : index
    %c0_29 = arith.constant 0 : index
    %75 = vector.load %arg2[%c6, %c0_28, %c0_29] : memref<9x20x4xf32, #tpu.memory_space<vmem>>, vector<1x20x4xf32>
    %76 = vector.shape_cast %75 : vector<1x20x4xf32> to vector<20x4xf32>
    %c241_i32 = arith.constant 241 : i32
    %77 = tpu.dynamic_rotate %1 by %c241_i32 dim 1 : vector<4x256xf32>, i32 -> vector<4x256xf32>
    %78 = arith.mulf %26, %30 : vector<1x256xf32>
    %79 = vector.broadcast %78 : vector<1x256xf32> to vector<4x256xf32>
    %80 = arith.mulf %77, %79 : vector<4x256xf32>
    %cst_30 = arith.constant dense<0.000000e+00> : vector<20x256xf32>
    %81 = tpu.matmul %76, %80, %cst_30 {dimension_numbers = #tpu.dot_dimension_numbers<[1], [0], [0], [1], [0, 0, 1, 1], [], []>} : vector<20x4xf32>, vector<4x256xf32>, vector<20x256xf32> -> vector<20x256xf32>
    %82 = arith.addf %74, %81 : vector<20x256xf32>
    %c7 = arith.constant 7 : index
    %c0_31 = arith.constant 0 : index
    %c0_32 = arith.constant 0 : index
    %83 = vector.load %arg2[%c7, %c0_31, %c0_32] : memref<9x20x4xf32, #tpu.memory_space<vmem>>, vector<1x20x4xf32>
    %84 = vector.shape_cast %83 : vector<1x20x4xf32> to vector<20x4xf32>
    %c240_i32_33 = arith.constant 240 : i32
    %85 = tpu.dynamic_rotate %1 by %c240_i32_33 dim 1 : vector<4x256xf32>, i32 -> vector<4x256xf32>
    %86 = vector.broadcast %26 : vector<1x256xf32> to vector<4x256xf32>
    %87 = arith.mulf %85, %86 : vector<4x256xf32>
    %cst_34 = arith.constant dense<0.000000e+00> : vector<20x256xf32>
    %88 = tpu.matmul %84, %87, %cst_34 {dimension_numbers = #tpu.dot_dimension_numbers<[1], [0], [0], [1], [0, 0, 1, 1], [], []>} : vector<20x4xf32>, vector<4x256xf32>, vector<20x256xf32> -> vector<20x256xf32>
    %89 = arith.addf %82, %88 : vector<20x256xf32>
    %c8 = arith.constant 8 : index
    %c0_35 = arith.constant 0 : index
    %c0_36 = arith.constant 0 : index
    %90 = vector.load %arg2[%c8, %c0_35, %c0_36] : memref<9x20x4xf32, #tpu.memory_space<vmem>>, vector<1x20x4xf32>
    %91 = vector.shape_cast %90 : vector<1x20x4xf32> to vector<20x4xf32>
    %c239_i32 = arith.constant 239 : i32
    %92 = tpu.dynamic_rotate %1 by %c239_i32 dim 1 : vector<4x256xf32>, i32 -> vector<4x256xf32>
    %93 = arith.mulf %26, %34 : vector<1x256xf32>
    %94 = vector.broadcast %93 : vector<1x256xf32> to vector<4x256xf32>
    %95 = arith.mulf %92, %94 : vector<4x256xf32>
    %cst_37 = arith.constant dense<0.000000e+00> : vector<20x256xf32>
    %96 = tpu.matmul %91, %95, %cst_37 {dimension_numbers = #tpu.dot_dimension_numbers<[1], [0], [0], [1], [0, 0, 1, 1], [], []>} : vector<20x4xf32>, vector<4x256xf32>, vector<20x256xf32> -> vector<20x256xf32>
    %97 = arith.addf %89, %96 : vector<20x256xf32>
    %c0_38 = arith.constant 0 : index
    %c0_39 = arith.constant 0 : index
    %98 = vector.load %arg3[%c0_38, %c0_39] : memref<20x1xf32, #tpu.memory_space<vmem>>, vector<20x1xf32>
    %99 = vector.broadcast %98 : vector<20x1xf32> to vector<20x256xf32>
    %100 = arith.addf %97, %99 : vector<20x256xf32>
    %cst_40 = arith.constant 0.000000e+00 : f32
    %101 = vector.broadcast %cst_40 : f32 to vector<20x256xf32>
    %102 = arith.maximumf %100, %101 : vector<20x256xf32>
    %c0_41 = arith.constant 0 : index
    %c0_42 = arith.constant 0 : index
    %c0_43 = arith.constant 0 : index
    %103 = vector.load %arg4[%c0_41, %c0_42, %c0_43] : memref<9x4x20xf32, #tpu.memory_space<vmem>>, vector<1x4x20xf32>
    %104 = vector.shape_cast %103 : vector<1x4x20xf32> to vector<4x20xf32>
    %c17_i32_44 = arith.constant 17 : i32
    %105 = tpu.dynamic_rotate %102 by %c17_i32_44 dim 1 : vector<20x256xf32>, i32 -> vector<20x256xf32>
    %106 = arith.mulf %22, %30 : vector<1x256xf32>
    %107 = vector.broadcast %106 : vector<1x256xf32> to vector<20x256xf32>
    %108 = arith.mulf %105, %107 : vector<20x256xf32>
    %cst_45 = arith.constant dense<0.000000e+00> : vector<4x256xf32>
    %109 = tpu.matmul %104, %108, %cst_45 {dimension_numbers = #tpu.dot_dimension_numbers<[1], [0], [0], [1], [0, 0, 1, 1], [], []>} : vector<4x20xf32>, vector<20x256xf32>, vector<4x256xf32> -> vector<4x256xf32>
    %c1_46 = arith.constant 1 : index
    %c0_47 = arith.constant 0 : index
    %c0_48 = arith.constant 0 : index
    %110 = vector.load %arg4[%c1_46, %c0_47, %c0_48] : memref<9x4x20xf32, #tpu.memory_space<vmem>>, vector<1x4x20xf32>
    %111 = vector.shape_cast %110 : vector<1x4x20xf32> to vector<4x20xf32>
    %c16_i32_49 = arith.constant 16 : i32
    %112 = tpu.dynamic_rotate %102 by %c16_i32_49 dim 1 : vector<20x256xf32>, i32 -> vector<20x256xf32>
    %113 = vector.broadcast %22 : vector<1x256xf32> to vector<20x256xf32>
    %114 = arith.mulf %112, %113 : vector<20x256xf32>
    %cst_50 = arith.constant dense<0.000000e+00> : vector<4x256xf32>
    %115 = tpu.matmul %111, %114, %cst_50 {dimension_numbers = #tpu.dot_dimension_numbers<[1], [0], [0], [1], [0, 0, 1, 1], [], []>} : vector<4x20xf32>, vector<20x256xf32>, vector<4x256xf32> -> vector<4x256xf32>
    %116 = arith.addf %109, %115 : vector<4x256xf32>
    %c2_51 = arith.constant 2 : index
    %c0_52 = arith.constant 0 : index
    %c0_53 = arith.constant 0 : index
    %117 = vector.load %arg4[%c2_51, %c0_52, %c0_53] : memref<9x4x20xf32, #tpu.memory_space<vmem>>, vector<1x4x20xf32>
    %118 = vector.shape_cast %117 : vector<1x4x20xf32> to vector<4x20xf32>
    %c15_i32_54 = arith.constant 15 : i32
    %119 = tpu.dynamic_rotate %102 by %c15_i32_54 dim 1 : vector<20x256xf32>, i32 -> vector<20x256xf32>
    %120 = arith.mulf %22, %34 : vector<1x256xf32>
    %121 = vector.broadcast %120 : vector<1x256xf32> to vector<20x256xf32>
    %122 = arith.mulf %119, %121 : vector<20x256xf32>
    %cst_55 = arith.constant dense<0.000000e+00> : vector<4x256xf32>
    %123 = tpu.matmul %118, %122, %cst_55 {dimension_numbers = #tpu.dot_dimension_numbers<[1], [0], [0], [1], [0, 0, 1, 1], [], []>} : vector<4x20xf32>, vector<20x256xf32>, vector<4x256xf32> -> vector<4x256xf32>
    %124 = arith.addf %116, %123 : vector<4x256xf32>
    %c3_56 = arith.constant 3 : index
    %c0_57 = arith.constant 0 : index
    %c0_58 = arith.constant 0 : index
    %125 = vector.load %arg4[%c3_56, %c0_57, %c0_58] : memref<9x4x20xf32, #tpu.memory_space<vmem>>, vector<1x4x20xf32>
    %126 = vector.shape_cast %125 : vector<1x4x20xf32> to vector<4x20xf32>
    %c1_i32_59 = arith.constant 1 : i32
    %127 = tpu.dynamic_rotate %102 by %c1_i32_59 dim 1 : vector<20x256xf32>, i32 -> vector<20x256xf32>
    %128 = vector.broadcast %30 : vector<1x256xf32> to vector<20x256xf32>
    %129 = arith.mulf %127, %128 : vector<20x256xf32>
    %cst_60 = arith.constant dense<0.000000e+00> : vector<4x256xf32>
    %130 = tpu.matmul %126, %129, %cst_60 {dimension_numbers = #tpu.dot_dimension_numbers<[1], [0], [0], [1], [0, 0, 1, 1], [], []>} : vector<4x20xf32>, vector<20x256xf32>, vector<4x256xf32> -> vector<4x256xf32>
    %131 = arith.addf %124, %130 : vector<4x256xf32>
    %c4_61 = arith.constant 4 : index
    %c0_62 = arith.constant 0 : index
    %c0_63 = arith.constant 0 : index
    %132 = vector.load %arg4[%c4_61, %c0_62, %c0_63] : memref<9x4x20xf32, #tpu.memory_space<vmem>>, vector<1x4x20xf32>
    %133 = vector.shape_cast %132 : vector<1x4x20xf32> to vector<4x20xf32>
    %cst_64 = arith.constant dense<0.000000e+00> : vector<4x256xf32>
    %134 = tpu.matmul %133, %102, %cst_64 {dimension_numbers = #tpu.dot_dimension_numbers<[1], [0], [0], [1], [0, 0, 1, 1], [], []>} : vector<4x20xf32>, vector<20x256xf32>, vector<4x256xf32> -> vector<4x256xf32>
    %135 = arith.addf %131, %134 : vector<4x256xf32>
    %c5_65 = arith.constant 5 : index
    %c0_66 = arith.constant 0 : index
    %c0_67 = arith.constant 0 : index
    %136 = vector.load %arg4[%c5_65, %c0_66, %c0_67] : memref<9x4x20xf32, #tpu.memory_space<vmem>>, vector<1x4x20xf32>
    %137 = vector.shape_cast %136 : vector<1x4x20xf32> to vector<4x20xf32>
    %c255_i32_68 = arith.constant 255 : i32
    %138 = tpu.dynamic_rotate %102 by %c255_i32_68 dim 1 : vector<20x256xf32>, i32 -> vector<20x256xf32>
    %139 = vector.broadcast %34 : vector<1x256xf32> to vector<20x256xf32>
    %140 = arith.mulf %138, %139 : vector<20x256xf32>
    %cst_69 = arith.constant dense<0.000000e+00> : vector<4x256xf32>
    %141 = tpu.matmul %137, %140, %cst_69 {dimension_numbers = #tpu.dot_dimension_numbers<[1], [0], [0], [1], [0, 0, 1, 1], [], []>} : vector<4x20xf32>, vector<20x256xf32>, vector<4x256xf32> -> vector<4x256xf32>
    %142 = arith.addf %135, %141 : vector<4x256xf32>
    %c6_70 = arith.constant 6 : index
    %c0_71 = arith.constant 0 : index
    %c0_72 = arith.constant 0 : index
    %143 = vector.load %arg4[%c6_70, %c0_71, %c0_72] : memref<9x4x20xf32, #tpu.memory_space<vmem>>, vector<1x4x20xf32>
    %144 = vector.shape_cast %143 : vector<1x4x20xf32> to vector<4x20xf32>
    %c241_i32_73 = arith.constant 241 : i32
    %145 = tpu.dynamic_rotate %102 by %c241_i32_73 dim 1 : vector<20x256xf32>, i32 -> vector<20x256xf32>
    %146 = arith.mulf %26, %30 : vector<1x256xf32>
    %147 = vector.broadcast %146 : vector<1x256xf32> to vector<20x256xf32>
    %148 = arith.mulf %145, %147 : vector<20x256xf32>
    %cst_74 = arith.constant dense<0.000000e+00> : vector<4x256xf32>
    %149 = tpu.matmul %144, %148, %cst_74 {dimension_numbers = #tpu.dot_dimension_numbers<[1], [0], [0], [1], [0, 0, 1, 1], [], []>} : vector<4x20xf32>, vector<20x256xf32>, vector<4x256xf32> -> vector<4x256xf32>
    %150 = arith.addf %142, %149 : vector<4x256xf32>
    %c7_75 = arith.constant 7 : index
    %c0_76 = arith.constant 0 : index
    %c0_77 = arith.constant 0 : index
    %151 = vector.load %arg4[%c7_75, %c0_76, %c0_77] : memref<9x4x20xf32, #tpu.memory_space<vmem>>, vector<1x4x20xf32>
    %152 = vector.shape_cast %151 : vector<1x4x20xf32> to vector<4x20xf32>
    %c240_i32_78 = arith.constant 240 : i32
    %153 = tpu.dynamic_rotate %102 by %c240_i32_78 dim 1 : vector<20x256xf32>, i32 -> vector<20x256xf32>
    %154 = vector.broadcast %26 : vector<1x256xf32> to vector<20x256xf32>
    %155 = arith.mulf %153, %154 : vector<20x256xf32>
    %cst_79 = arith.constant dense<0.000000e+00> : vector<4x256xf32>
    %156 = tpu.matmul %152, %155, %cst_79 {dimension_numbers = #tpu.dot_dimension_numbers<[1], [0], [0], [1], [0, 0, 1, 1], [], []>} : vector<4x20xf32>, vector<20x256xf32>, vector<4x256xf32> -> vector<4x256xf32>
    %157 = arith.addf %150, %156 : vector<4x256xf32>
    %c8_80 = arith.constant 8 : index
    %c0_81 = arith.constant 0 : index
    %c0_82 = arith.constant 0 : index
    %158 = vector.load %arg4[%c8_80, %c0_81, %c0_82] : memref<9x4x20xf32, #tpu.memory_space<vmem>>, vector<1x4x20xf32>
    %159 = vector.shape_cast %158 : vector<1x4x20xf32> to vector<4x20xf32>
    %c239_i32_83 = arith.constant 239 : i32
    %160 = tpu.dynamic_rotate %102 by %c239_i32_83 dim 1 : vector<20x256xf32>, i32 -> vector<20x256xf32>
    %161 = arith.mulf %26, %34 : vector<1x256xf32>
    %162 = vector.broadcast %161 : vector<1x256xf32> to vector<20x256xf32>
    %163 = arith.mulf %160, %162 : vector<20x256xf32>
    %cst_84 = arith.constant dense<0.000000e+00> : vector<4x256xf32>
    %164 = tpu.matmul %159, %163, %cst_84 {dimension_numbers = #tpu.dot_dimension_numbers<[1], [0], [0], [1], [0, 0, 1, 1], [], []>} : vector<4x20xf32>, vector<20x256xf32>, vector<4x256xf32> -> vector<4x256xf32>
    %165 = arith.addf %157, %164 : vector<4x256xf32>
    %c0_85 = arith.constant 0 : index
    %c0_86 = arith.constant 0 : index
    %166 = vector.load %arg5[%c0_85, %c0_86] : memref<4x1xf32, #tpu.memory_space<vmem>>, vector<4x1xf32>
    %167 = vector.broadcast %166 : vector<4x1xf32> to vector<4x256xf32>
    %168 = arith.addf %165, %167 : vector<4x256xf32>
    %169 = arith.addf %1, %168 : vector<4x256xf32>
    %c0_87 = arith.constant 0 : index
    %c0_88 = arith.constant 0 : index
    %c0_89 = arith.constant 0 : index
    %170 = vector.load %arg6[%c0_87, %c0_88, %c0_89] : memref<1x4x256xf32, #tpu.memory_space<vmem>>, vector<1x4x256xf32>
    %171 = vector.shape_cast %170 : vector<1x4x256xf32> to vector<4x256xf32>
    %172 = vector.shape_cast %169 : vector<4x256xf32> to vector<1x4x256xf32>
    tpu.vector_store %arg6[%c0_87, %c0_88, %c0_89], %172 {strides = array<i32>} : memref<1x4x256xf32, #tpu.memory_space<vmem>>, vector<1x4x256xf32>,
    return
  }
  func.func @transform_0(%arg0: i32) -> (i32, i32, i32) {
    %c0_i32 = arith.constant 0 : i32
    %c0_i32_0 = arith.constant 0 : i32
    %c0_i32_1 = arith.constant 0 : i32
    return %arg0, %c0_i32, %c0_i32_0 : i32, i32, i32
  }
  func.func @transform_1(%arg0: i32) -> (i32, i32, i32) {
    %c0_i32 = arith.constant 0 : i32
    %c0_i32_0 = arith.constant 0 : i32
    %c0_i32_1 = arith.constant 0 : i32
    %c0_i32_2 = arith.constant 0 : i32
    return %c0_i32, %c0_i32_0, %c0_i32_1 : i32, i32, i32
  }
  func.func @transform_2(%arg0: i32) -> (i32, i32) {
    %c0_i32 = arith.constant 0 : i32
    %c0_i32_0 = arith.constant 0 : i32
    %c0_i32_1 = arith.constant 0 : i32
    return %c0_i32, %c0_i32_0 : i32, i32
  }
  func.func @transform_3(%arg0: i32) -> (i32, i32, i32) {
    %c0_i32 = arith.constant 0 : i32
    %c0_i32_0 = arith.constant 0 : i32
    %c0_i32_1 = arith.constant 0 : i32
    %c0_i32_2 = arith.constant 0 : i32
    return %c0_i32, %c0_i32_0, %c0_i32_1 : i32, i32, i32
  }
  func.func @transform_4(%arg0: i32) -> (i32, i32) {
    %c0_i32 = arith.constant 0 : i32
    %c0_i32_0 = arith.constant 0 : i32
    %c0_i32_1 = arith.constant 0 : i32
    return %c0_i32, %c0_i32_0 : i32, i32
  }
  func.func @transform_5(%arg0: i32) -> (i32, i32, i32) {
    %c0_i32 = arith.constant 0 : i32
    %c0_i32_0 = arith.constant 0 : i32
    %c0_i32_1 = arith.constant 0 : i32
    return %arg0, %c0_i32, %c0_i32_0 : i32, i32, i32
  }
}

</mosaic_0001>

<bundles_post_ra>
// kernel: tpu_custom_call.1
= control target key start
LH: loop header
LB: loop body
LE: loop exit
PB: predicated region body
PF: predicated region fallthrough
CT: control target
= control target key end

     0   :  { %10 = vsyncpa [#allocation3], 0  ;;  %s2977_s0 = inlined_call_operand.vmem [shape: f32[2,4,256], index: 0, kind: input, shape index: {}]   ;;  %s2978_s1 = inlined_call_operand.vmem [shape: f32[9,20,4], index: 1, kind: input, shape index: {}]   ;;  %s2979_s2 = inlined_call_operand.vmem [shape: f32[20,1], index: 2, kind: input, shape index: {}]   ;;  %s2980_s3 = inlined_call_operand.vmem [shape: f32[9,4,20], index: 3, kind: input, shape index: {}]   ;;  %s2981_s4 = inlined_call_operand.vmem [shape: f32[4,1], index: 4, kind: input, shape index: {}]   ;;  %s2982_s5 = inlined_call_operand.hbm [shape: f32[2,4,256], index: 5, kind: output, shape index: {}]  }
   0x1   :  { %12 = vsyncpa [#allocation3 + $0x1], 0  ;;  %s2181_s18 = smov 0   ;;  %s2183_s19 = smov 0  }
   0x2   :  { %s2185_s20 = smov 0   ;;  %s2187_s21 = smov 0  }
   0x3 LB: > { %s2202_s22 = sadd.s32 4294967295, %s2139_s21   ;;  %s1865_s23 = sadd.s32 4294967294, %s2139_s21   ;;  %s2139_s21 = sphi %s2187_s21, %s2988_s21   ;;  %s2135_s20 = sphi %s2185_s20, %s2987_s20   ;;  %s2131_s19 = sphi %s2183_s19, %s2986_s19   ;;  %s2127_s18 = sphi %s2181_s18, %s2985_s18  }
   0x4   : > { %s2206_s24 = sadd.s32 1, %s2139_s21   ;;  %s135_s25 = sadd.s32 1, %s2135_s20 }
   0x5   : > { %s132_s26 = ssub.s32 %s2139_s21, %s2206_s24  ;;  %p145_p0 = scmp.ne.s32.totalorder %s2135_s20, %s2131_s19 }
   0x6   : > { %p133_p1 = scmp.eq.s32.totalorder %s132_s26, 0  ;;  %p146_p2 = scmp.eq.s32.totalorder %s2202_s22, 1 }
   0x7   : > { %p151_p3 = scmp.ne.s32.totalorder %s2131_s19, %s2127_s18  ;;  %p152_p4 = scmp.eq.s32.totalorder %s1865_s23, 1 }
   0x8   : > { %s2217_s27 = scalar_select %p133_p1, %s2135_s20, %s135_s25  }
   0x9   : > { %p2219_p5 = por %p146_p2, %p145_p0  ;;  %p2223_p6 = por %p152_p4, %p151_p3 }
   0xa   : > { %p1868_p7 = scmp.ge.s32.totalorder %s2139_s21, 1  ;;  %p190_p8 = scmp.lt.s32.totalorder %s2139_s21, 3 }
   0xc   : > { %p191_p9 = pnand %p1868_p7, %p190_p8 }
   0xd   : > { %p218_p10 = scmp.lt.s32.totalorder (!%p191_p9), %s2202_s22, 1  ;;  %s2141_s10 = smov (!%p191_p9), 17  }
   0xe   : > { %194 = sbr.rel (%p191_p9) target bundleno = 781 (0x30d), region = 40  ;;  %s2142_s11 = smov (!%p191_p9), 16  }
   0xf   : > { %s2143_s12 = smov (!%p191_p9), 15   ;;  %s2144_s13 = smov (!%p191_p9), 1  }
  0x10   : > { %s2145_s14 = smov (!%p191_p9), 127   ;;  %s2146_s15 = smov (!%p191_p9), 113  }
  0x11   : > { %s2147_s16 = smov (!%p191_p9), 112   ;;  %s2148_s17 = smov (!%p191_p9), 111  }
  0x13   : > { %s219_s30 = scalar_select %p218_p10, %s2202_s22, 1  ;;  %v224_v19 = vlaneseq  ;;  %v2149_v26 = vmov 0.0   ;;  %vm323_vm5 = vcmask 1043456   ;;  %vm313_vm6 = vcmask 31744   ;;  %v275_v36 = vld [vmem:[%s2978_s1] sm:$0xff]  ;;  %v1878_v45 = vld [vmem:[%s2978_s1 + $0x18] sm:$0xff] }
  0x14   : > { %v276_v50 = vld [vmem:[%s2978_s1 + $0x8] sm:$0xff]  ;;  %v1879_v52 = vld [vmem:[%s2978_s1 + $0x20] sm:$0xff]  ;;  %v277_v57 = vld [vmem:[%s2978_s1 + $0x10] sm:$0xf] }
  0x15   : > { %s2023_s6 = sshll.u32 %s219_s30, 3  ;;  %v2265_v20 = vand.u32 127, %v224_v19  ;;  %v1880_v60 = vld [vmem:[%s2978_s1 + $0x28] sm:$0xf]  ;;  %v1897_v63 = vld [vmem:[%s2978_s1 + $0x30] sm:$0xff] }
  0x16   : > { %s222_s9 = scalar_lea.vmem %s2977_s0, %s2023_s6  ;;  %v1908_v61 = vld [vmem:[%s2978_s1 + $0x48] sm:$0xff] }
  0x17   : > { %v2234_v0 = vld [vmem:[%s222_s9] sm:$0xff]  ;;  %v2268_v21 = vadd.s32 128, %v2265_v20  ;;  %v231_v22 = vand.u32 15, %v2265_v20  ;;  %vm251_vm0 = vcmp.ge.s32.totalorder %v2265_v20, 16  ;;  %vm288_vm3 = vcmp.lt.s32.totalorder %v2265_v20, 17 }
  0x18   : > { %279 = vst [vmem:[#allocation1] ss:$2 sm:$0xff] %v2234_v0  ;;  %v2274_v27 = vsel %vm251_vm0, 1.0, %v2149_v26  ;;  %vm462_vm8 = vcmp.lt.s32.totalorder %v2265_v20, 15  ;;  %vm308_vm9 = vcmp.lt.s32.totalorder %v2265_v20, 16  ;;  %vm555_vm10 = vcmp.lt.s32.totalorder %v2265_v20, 1 }
  0x19   : > { %v238_v24 = vand.u32 15, %v2268_v21  ;;  %vm263_vm1 = vcmp.gt.s32.totalorder %v231_v22, 0  ;;  %vm269_vm4 = vcmp.lt.s32.totalorder %v231_v22, 15  ;;  %vm724_vm11 = vcmp.lt.s32.totalorder %v2265_v20, 127 }
  0x1a   : > { %v2277_v28 = vsel %vm263_vm1, 1.0, %v2149_v26  ;;  %v2298_v39 = vsel %vm269_vm4, 1.0, %v2149_v26  ;;  %vm258_vm12 = vcmp.lt.s32.totalorder %v2268_v21, 240  ;;  %vm815_vm13 = vcmp.lt.s32.totalorder %v2265_v20, 113 }
  0x1b   : > { %vm264_vm2 = vcmp.gt.s32.totalorder %v238_v24, 0  ;;  %v2282_v29 = vmul.f32 %v2277_v28, %v2274_v27  ;;  %vm270_vm7 = vcmp.lt.s32.totalorder %v238_v24, 15  ;;  %v2312_v42 = vmul.f32 %v2298_v39, %v2274_v27 }
  0x1c   : > { %v2285_v30 = vsel %vm264_vm2, 1.0, %v2149_v26  ;;  %v2305_v40 = vsel %vm270_vm7, 1.0, %v2149_v26  ;;  %vm908_vm14 = vcmp.lt.s32.totalorder %v2265_v20, 112  ;;  %vm999_vm15 = vcmp.lt.s32.totalorder %v2265_v20, 111 }
  0x1d   : > { %vm1160_vm0 = vcmask 162816  }
  0x1f   : > { %v280_v1 = vld.sshfl [vmem:[#allocation1] sm:$0xff pattern:$0x75316420]  ;;  %v281_v2 = vld.sshfl [vmem:[#allocation1 + $0x8] sm:$0xff pattern:$0x75316420] }
  0x20   : > { %284 = vrot.lane.b32.xlu1 %v280_v1, %s2141_s10  ;;  %299 = vst [vmem:[#allocation1] ss:$2 sm:$0xff] %v2234_v0 }
  0x27   : > { %v300_v3 = vld.sshfl [vmem:[#allocation1] sm:$0xff pattern:$0x75316420]  ;;  %v301_v4 = vld.sshfl [vmem:[#allocation1 + $0x8] sm:$0xff pattern:$0x75316420] }
  0x28   : > { %286 = vrot.lane.b32.xlu1 %v281_v2, %s2141_s10  ;;  %304 = vrot.lane.b32.xlu0 %v300_v3, %s2142_s11  ;;  %453 = vst [vmem:[#allocation1] ss:$2 sm:$0xff] %v2234_v0 }
  0x2f   : > { %v454_v5 = vld.sshfl [vmem:[#allocation1] sm:$0xff pattern:$0x75316420]  ;;  %v455_v6 = vld.sshfl [vmem:[#allocation1 + $0x8] sm:$0xff pattern:$0x75316420] }
  0x30   : > { %306 = vrot.lane.b32.xlu0 %v301_v4, %s2142_s11  ;;  %546 = vst [vmem:[#allocation1] ss:$2 sm:$0xff] %v2234_v0  ;;  %458 = vrot.lane.b32.xlu2 %v454_v5, %s2143_s12  ;;  %v1909_v4 = vld [vmem:[%s2978_s1 + $0x50] sm:$0xff] }
  0x37   : > { %v548_v7 = vld.sshfl [vmem:[#allocation1 + $0x8] sm:$0xff pattern:$0x75316420]  ;;  %v547_v8 = vld.sshfl [vmem:[#allocation1] sm:$0xff pattern:$0x75316420] }
  0x38   : > { %553 = vrot.lane.b32.xlu1 %v548_v7, %s2144_s13  ;;  %551 = vrot.lane.b32.xlu0 %v547_v8, %s2144_s13  ;;  %637 = vst [vmem:[#allocation1] ss:$2 sm:$0xff] %v2234_v0  ;;  %v2391_v7 = vsel %vm258_vm12, 1.0, %v2149_v26  ;;  %v1931_v26 = vld [vmem:[%s2978_s1 + $0x80] sm:$0xff] }
  0x39   : > { %460 = vrot.lane.b32.xlu2 %v455_v6, %s2143_s12 }
  0x3f   : > { %v2249_v9 = vld.sshfl [vmem:[#allocation1] sm:$0xff pattern:$0x75316420]  ;;  %v2251_v10 = vld.sshfl [vmem:[#allocation1 + $0x8] sm:$0xff pattern:$0x75316420] }
  0x40   : > { %715 = vst [vmem:[#allocation1] ss:$2 sm:$0xff] %v2234_v0 }
  0x47   : > { %v717_v11 = vld.sshfl [vmem:[#allocation1 + $0x8] sm:$0xff pattern:$0x75316420]  ;;  %v716_v12 = vld.sshfl [vmem:[#allocation1] sm:$0xff pattern:$0x75316420] }
  0x48   : > { %722 = vrot.lane.b32.xlu0 %v717_v11, %s2145_s14  ;;  %806 = vst [vmem:[#allocation1] ss:$2 sm:$0xff] %v2234_v0  ;;  %720 = vrot.lane.b32.xlu2 %v716_v12, %s2145_s14 }
  0x4f   : > { %v807_v13 = vld.sshfl [vmem:[#allocation1] sm:$0xff pattern:$0x75316420]  ;;  %v808_v14 = vld.sshfl [vmem:[#allocation1 + $0x8] sm:$0xff pattern:$0x75316420] }
  0x50   : > { %811 = vrot.lane.b32.xlu1 %v807_v13, %s2146_s15  ;;  %899 = vst [vmem:[#allocation1] ss:$2 sm:$0xff] %v2234_v0  ;;  %813 = vrot.lane.b32.xlu2 %v808_v14, %s2146_s15  ;;  %v1910_v14 = vld [vmem:[%s2978_s1 + $0x58] sm:$0xf] }
  0x57   : > { %v901_v15 = vld.sshfl [vmem:[#allocation1 + $0x8] sm:$0xff pattern:$0x75316420]  ;;  %v900_v16 = vld.sshfl [vmem:[#allocation1] sm:$0xff pattern:$0x75316420] }
  0x58   : > { %906 = vrot.lane.b32.xlu1 %v901_v15, %s2147_s16  ;;  %904 = vrot.lane.b32.xlu0 %v900_v16, %s2147_s16  ;;  %990 = vst [vmem:[#allocation1] ss:$2 sm:$0xff] %v2234_v0 }
  0x5f   : > { %v992_v17 = vld.sshfl [vmem:[#allocation1 + $0x8] sm:$0xff pattern:$0x75316420]  ;;  %v991_v18 = vld.sshfl [vmem:[#allocation1] sm:$0xff pattern:$0x75316420] }
  0x60   : > { %997 = vrot.lane.b32.xlu0 %v992_v17, %s2148_s17  ;;  %995 = vrot.lane.b32.xlu2 %v991_v18, %s2148_s17  ;;  %v1899_v17 = vld [vmem:[%s2978_s1 + $0x40] sm:$0xf] }
  0x8a   : > { %v459_v25 = vpop.permute.xlu2 %458 }
  0x92   : > { %v285_v23 = vpop.permute.xlu1 %284 }
  0x93   : > { %v461_v38 = vpop.permute.xlu2 %460 }
  0x94   : > { %v463_v41 = vsel %vm462_vm8, %v459_v25, %v461_v38  ;;  %v464_v43 = vsel %vm462_vm8, %v461_v38, %v459_v25  ;;  %v1919_v25 = vld [vmem:[%s2978_s1 + $0x60] sm:$0xff] }
  0x95   : > { %v468_v46 = vmul.f32 %v2305_v40, %v463_v41  ;;  %v467_v51 = vmul.f32 %v2312_v42, %v464_v43  ;;  %v1921_v43 = vld [vmem:[%s2978_s1 + $0x70] sm:$0xf] }
  0x9a   : > { %v287_v31 = vpop.permute.xlu1 %286  ;;  %v305_v32 = vpop.permute.xlu0 %304 }
  0x9b   : > { %v289_v33 = vsel %vm288_vm3, %v285_v23, %v287_v31  ;;  %v290_v34 = vsel %vm288_vm3, %v287_v31, %v285_v23  ;;  %v1930_v23 = vld [vmem:[%s2978_s1 + $0x78] sm:$0xff] }
  0x9c   : > { %v294_v35 = vmul.f32 %v2285_v30, %v289_v33  ;;  %v293_v37 = vmul.f32 %v2282_v29, %v290_v34  ;;  %v1920_v33 = vld [vmem:[%s2978_s1 + $0x68] sm:$0xff] }
  0x9e   : > { %1893 = vmatpush.msk.msra.mxu3 %vm323_vm5, %v294_v35  ;;  %1889 = vmatpush.msk.msra.mxu2 %vm323_vm5, %v293_v37  ;;  %v1932_v37 = vld [vmem:[%s2978_s1 + $0x88] sm:$0xf] }
  0x9f   : > { %1894 = vmatmul.msk.f32.vlgmr.msra.gmra.mxu3 %vm313_vm6, %v275_v36  ;;  %1890 = vmatmul.msk.f32.vlgmr.msra.gmra.mxu2 %vm313_vm6, %v275_v36 }
  0xa2   : > { %v307_v44 = vpop.permute.xlu0 %306  ;;  %v721_v62 = vpop.permute.xlu2 %720 }
  0xa3   : > { %v310_v47 = vsel %vm308_vm9, %v307_v44, %v305_v32  ;;  %v309_v48 = vsel %vm308_vm9, %v305_v32, %v307_v44  ;;  %v2447_v32 = vmul.f32 %v2305_v40, %v2391_v7  ;;  %v1952_v44 = vld [vmem:[%s2978_s1 + $0xa8] sm:$0xff] }
  0xa4   : > { %1885 = vmatpush.msk.msra.mxu1 %vm323_vm5, %v309_v48  ;;  %v311_v49 = vmul.f32 %v2274_v27, %v310_v47  ;;  %v1079_v47 = vld [vmem:[%s2979_s2] sm:$0xff]  ;;  %v2150_v48 = vmov 0  }
  0xa5   : > { %1886 = vmatmul.msk.f32.vlgmr.msra.gmra.mxu1 %vm313_vm6, %v1878_v45  ;;  %2076 = vset.pattern.permute.xlu0 %v2150_v48 }
  0xa6   : > { %1881 = vmatpush.msk.msra.mxu0 %vm323_vm5, %v311_v49  ;;  %1904 = vmatpush.msk.msrb.mxu1 %vm323_vm5, %v468_v46  ;;  %v1953_v46 = vld [vmem:[%s2978_s1 + $0xb0] sm:$0xff]  ;;  %v1942_v49 = vld [vmem:[%s2978_s1 + $0x98] sm:$0xff] }
  0xa7   : > { %1882 = vmatmul.msk.f32.vlgmr.msra.gmra.mxu0 %vm313_vm6, %v1878_v45  ;;  %1895 = vmatmul.msk.f32.gmra.mxu3 %vm313_vm6, %v276_v50  ;;  %v1941_v45 = vld [vmem:[%s2978_s1 + $0x90] sm:$0xff] }
  0xa8   : > { %1891 = vmatmul.msk.f32.gmra.mxu2 %vm313_vm6, %v276_v50  ;;  %1900 = vmatpush.msk.msrb.mxu0 %vm323_vm5, %v467_v51  ;;  %v1954_v50 = vld [vmem:[%s2978_s1 + $0xb8] sm:$0xf]  ;;  %v1943_v51 = vld [vmem:[%s2978_s1 + $0xa0] sm:$0xf] }
  0xa9   : > { %1926 = vmatpush.msk.msra.mxu1 %vm323_vm5, %v2251_v10  ;;  %v1898_v10 = vld [vmem:[%s2978_s1 + $0x38] sm:$0xff]  ;;  %1084 = vperm.xlu0 %2076, %v1079_v47  }
  0xaa   : > { %1922 = vmatpush.msk.msra.mxu0 %vm323_vm5, %v2249_v9  ;;  %v554_v53 = vpop.permute.xlu1 %553  ;;  %v552_v54 = vpop.permute.xlu0 %551  ;;  %v2396_v9 = vmul.f32 %v2285_v30, %v2391_v7  ;;  %2074 = vset.pattern.permute.xlu1 %v2150_v48 }
  0xab   : > { %v556_v55 = vsel %vm555_vm10, %v552_v54, %v554_v53  ;;  %v557_v56 = vsel %vm555_vm10, %v554_v53, %v552_v54  ;;  %v814_v8 = vpop.permute.xlu2 %813  ;;  %2075 = vset.pattern.permute.xlu2 %v2150_v48  ;;  %v1963_v53 = vld [vmem:[%s2978_s1 + $0xc0] sm:$0xff]  ;;  %v1964_v54 = vld [vmem:[%s2978_s1 + $0xc8] sm:$0xff] }
  0xac   : > { %v558_v58 = vmul.f32 %v2277_v28, %v557_v56  ;;  %v559_v59 = vmul.f32 %v2285_v30, %v556_v55  ;;  %v1080_v55 = vld [vmem:[%s2979_s2 + $0x8] sm:$0xff]  ;;  %v1965_v56 = vld [vmem:[%s2978_s1 + $0xd0] sm:$0xf] }
  0xad   : > { %1887 = vmatmul.msk.f32.gmra.mxu1 %vm313_vm6, %v1879_v52  ;;  %1089 = vperm.xlu2 %2075, %v1080_v55  }
  0xae   : > { %1915 = vmatpush.msk.msrb.mxu3 %vm323_vm5, %v559_v59  ;;  %1911 = vmatpush.msk.msrb.mxu2 %vm323_vm5, %v558_v58 }
  0xaf   : > { %1883 = vmatmul.msk.f32.gmra.mxu0 %vm313_vm6, %v1879_v52  ;;  %1896 = vmatmul.msk.f32.gmra.mxu3 %vm313_vm6, %v277_v57  ;;  %v1081_v52 = vld [vmem:[%s2979_s2 + $0x10] sm:$0xf] }
  0xb0   : > { %1892 = vmatmul.msk.f32.gmra.mxu2 %vm313_vm6, %v277_v57  ;;  %1094 = vperm.xlu1 %2074, %v1081_v52  }
  0xb5   : > { %1888 = vmatmul.msk.f32.gmra.mxu1 %vm313_vm6, %v1880_v60 }
  0xb7   : > { %1884 = vmatmul.msk.f32.gmra.mxu0 %vm313_vm6, %v1880_v60  ;;  %1916 = vmatmul.msk.f32.vlgmr.msrb.gmra.mxu3 %vm313_vm6, %v1908_v61 }
  0xb8   : > { %1912 = vmatmul.msk.f32.vlgmr.msrb.gmra.mxu2 %vm313_vm6, %v1908_v61 }
  0xba   : > { %v723_v1 = vpop.permute.xlu0 %722  ;;  %v996_v34 = vpop.permute.xlu2 %995 }
  0xbb   : > { %v725_v2 = vsel %vm724_vm11, %v721_v62, %v723_v1  ;;  %v726_v3 = vsel %vm724_vm11, %v723_v1, %v721_v62 }
  0xbc   : > { %v727_v5 = vmul.f32 %v2298_v39, %v725_v2  ;;  %v728_v6 = vmul.f32 %v2305_v40, %v726_v3 }
  0xbd   : > { %1905 = vmatmul.msk.f32.vlgmr.msrb.gmra.mxu1 %vm313_vm6, %v1897_v63 }
  0xbe   : > { %1937 = vmatpush.msk.msra.mxu3 %vm323_vm5, %v728_v6  ;;  %1933 = vmatpush.msk.msra.mxu2 %vm323_vm5, %v727_v5 }
  0xbf   : > { %1901 = vmatmul.msk.f32.vlgmr.msrb.gmra.mxu0 %vm313_vm6, %v1897_v63  ;;  %1917 = vmatmul.msk.f32.gmra.mxu3 %vm313_vm6, %v1909_v4 }
  0xc0   : > { %1913 = vmatmul.msk.f32.gmra.mxu2 %vm313_vm6, %v1909_v4 }
  0xc2   : > { %v812_v11 = vpop.permute.xlu1 %811 }
  0xc3   : > { %v816_v12 = vsel %vm815_vm13, %v812_v11, %v814_v8  ;;  %v817_v13 = vsel %vm815_vm13, %v814_v8, %v812_v11 }
  0xc4   : > { %v820_v15 = vmul.f32 %v2277_v28, %v816_v12  ;;  %v821_v16 = vmul.f32 %v2396_v9, %v817_v13 }
  0xc5   : > { %1906 = vmatmul.msk.f32.gmra.mxu1 %vm313_vm6, %v1898_v10 }
  0xc6   : > { %1944 = vmatpush.msk.msrb.mxu0 %vm323_vm5, %v820_v15  ;;  %1948 = vmatpush.msk.msrb.mxu1 %vm323_vm5, %v821_v16 }
  0xc7   : > { %1902 = vmatmul.msk.f32.gmra.mxu0 %vm313_vm6, %v1898_v10  ;;  %1918 = vmatmul.msk.f32.gmra.mxu3 %vm313_vm6, %v1910_v14 }
  0xc8   : > { %1914 = vmatmul.msk.f32.gmra.mxu2 %vm313_vm6, %v1910_v14 }
  0xca   : > { %v907_v18 = vpop.permute.xlu1 %906  ;;  %v905_v19 = vpop.permute.xlu0 %904 }
  0xcb   : > { %v909_v21 = vsel %vm908_vm14, %v905_v19, %v907_v18  ;;  %v910_v22 = vsel %vm908_vm14, %v907_v18, %v905_v19 }
  0xcc   : > { %v912_v24 = vmul.f32 %v2391_v7, %v910_v22  ;;  %1955 = vmatpush.msk.msrb.mxu2 %vm323_vm5, %v909_v21 }
  0xcd   : > { %1907 = vmatmul.msk.f32.gmra.mxu1 %vm313_vm6, %v1899_v17 }
  0xce   : > { %1959 = vmatpush.msk.msrb.mxu3 %vm323_vm5, %v912_v24 }
  0xcf   : > { %1903 = vmatmul.msk.f32.gmra.mxu0 %vm313_vm6, %v1899_v17  ;;  %1938 = vmatmul.msk.f32.vlgmr.msra.gmra.mxu3 %vm313_vm6, %v1930_v23 }
  0xd0   : > { %1934 = vmatmul.msk.f32.vlgmr.msra.gmra.mxu2 %vm313_vm6, %v1930_v23 }
  0xd2   : > { %v998_v31 = vpop.permute.xlu0 %997 }
  0xd3   : > { %v1000_v35 = vsel %vm999_vm15, %v996_v34, %v998_v31  ;;  %v1001_v36 = vsel %vm999_vm15, %v998_v31, %v996_v34 }
  0xd4   : > { %v1004_v38 = vmul.f32 %v2298_v39, %v1000_v35  ;;  %v1005_v41 = vmul.f32 %v2447_v32, %v1001_v36 }
  0xd5   : > { %1927 = vmatmul.msk.f32.vlgmr.msra.gmra.mxu1 %vm313_vm6, %v1919_v25 }
  0xd6   : > { %1970 = vmatpush.msk.msra.mxu1 %vm323_vm5, %v1005_v41 }
  0xd7   : > { %1923 = vmatmul.msk.f32.vlgmr.msra.gmra.mxu0 %vm313_vm6, %v1919_v25  ;;  %1939 = vmatmul.msk.f32.gmra.mxu3 %vm313_vm6, %v1931_v26 }
  0xd8   : > { %1935 = vmatmul.msk.f32.gmra.mxu2 %vm313_vm6, %v1931_v26  ;;  %1966 = vmatpush.msk.msra.mxu0 %vm323_vm5, %v1004_v38 }
  0xdd   : > { %1928 = vmatmul.msk.f32.gmra.mxu1 %vm313_vm6, %v1920_v33 }
  0xdf   : > { %1924 = vmatmul.msk.f32.gmra.mxu0 %vm313_vm6, %v1920_v33  ;;  %1940 = vmatmul.msk.f32.gmra.mxu3 %vm313_vm6, %v1932_v37 }
  0xe0   : > { %1936 = vmatmul.msk.f32.gmra.mxu2 %vm313_vm6, %v1932_v37 }
  0xe5   : > { %1929 = vmatmul.msk.f32.gmra.mxu1 %vm313_vm6, %v1921_v43 }
  0xe7   : > { %1925 = vmatmul.msk.f32.gmra.mxu0 %vm313_vm6, %v1921_v43  ;;  %1960 = vmatmul.msk.f32.vlgmr.msrb.gmra.mxu3 %vm313_vm6, %v1952_v44 }
  0xe8   : > { %1956 = vmatmul.msk.f32.vlgmr.msrb.gmra.mxu2 %vm313_vm6, %v1952_v44 }
  0xed   : > { %1949 = vmatmul.msk.f32.vlgmr.msrb.gmra.mxu1 %vm313_vm6, %v1941_v45 }
  0xef   : > { %1945 = vmatmul.msk.f32.vlgmr.msrb.gmra.mxu0 %vm313_vm6, %v1941_v45  ;;  %1961 = vmatmul.msk.f32.gmra.mxu3 %vm313_vm6, %v1953_v46 }
  0xf0   : > { %1957 = vmatmul.msk.f32.gmra.mxu2 %vm313_vm6, %v1953_v46 }
  0xf5   : > { %1950 = vmatmul.msk.f32.gmra.mxu1 %vm313_vm6, %v1942_v49 }
  0xf7   : > { %1946 = vmatmul.msk.f32.gmra.mxu0 %vm313_vm6, %v1942_v49  ;;  %1962 = vmatmul.msk.f32.gmra.mxu3 %vm313_vm6, %v1954_v50 }
  0xf8   : > { %1958 = vmatmul.msk.f32.gmra.mxu2 %vm313_vm6, %v1954_v50 }
  0xfd   : > { %1951 = vmatmul.msk.f32.gmra.mxu1 %vm313_vm6, %v1943_v51 }
  0xff   : > { %1947 = vmatmul.msk.f32.gmra.mxu0 %vm313_vm6, %v1943_v51 }
 0x105   : > { %1971 = vmatmul.msk.f32.vlgmr.msra.gmra.mxu1 %vm313_vm6, %v1963_v53 }
 0x107   : > { %1967 = vmatmul.msk.f32.vlgmr.msra.gmra.mxu0 %vm313_vm6, %v1963_v53 }
 0x10d   : > { %1972 = vmatmul.msk.f32.gmra.mxu1 %vm313_vm6, %v1964_v54 }
 0x10f   : > { %1968 = vmatmul.msk.f32.gmra.mxu0 %vm313_vm6, %v1964_v54 }
 0x115   : > { %1973 = vmatmul.msk.f32.gmra.mxu1 %vm313_vm6, %v1965_v56 }
 0x117   : > { %1969 = vmatmul.msk.f32.gmra.mxu0 %vm313_vm6, %v1965_v56 }
 0x122   : > { %v373_v57 = vpop.f32.mrf.mxu1  ;;  %v440_v58 = vpop.f32.mrf.mxu3 }
 0x123   : > { %v414_v59 = vpop.f32.mrf.mxu2  ;;  %v441_v53 = vadd.f32 %v440_v58, %v373_v57 }
 0x124   : > { %v347_v60 = vpop.f32.mrf.mxu0 }
 0x125   : > { %v415_v54 = vadd.f32 %v414_v59, %v347_v60 }
 0x12a   : > { %v376_v61 = vpop.f32.mrf.mxu1  ;;  %v443_v62 = vpop.f32.mrf.mxu3 }
 0x12b   : > { %v417_v63 = vpop.f32.mrf.mxu2 }
 0x12c   : > { %v350_v1 = vpop.f32.mrf.mxu0 }
 0x12d   : > { %v418_v2 = vadd.f32 %v417_v63, %v350_v1 }
 0x132   : > { %v379_v3 = vpop.f32.mrf.mxu1  ;;  %v446_v4 = vpop.f32.mrf.mxu3 }
 0x133   : > { %v447_v5 = vadd.f32 %v446_v4, %v379_v3  ;;  %v420_v6 = vpop.f32.mrf.mxu2  ;;  %v444_v4 = vadd.f32 %v443_v62, %v376_v61 }
 0x134   : > { %v353_v8 = vpop.f32.mrf.mxu0 }
 0x135   : > { %v421_v10 = vadd.f32 %v420_v6, %v353_v8 }
 0x13a   : > { %v527_v11 = vpop.f32.mrf.mxu1  ;;  %v618_v12 = vpop.f32.mrf.mxu3 }
 0x13b   : > { %v592_v13 = vpop.f32.mrf.mxu2  ;;  %v537_v55 = vadd.f32 %v527_v11, %v441_v53 }
 0x13c   : > { %v501_v14 = vpop.f32.mrf.mxu0 }
 0x13d   : > { %v536_v1 = vadd.f32 %v501_v14, %v415_v54  ;;  %v628_v3 = vadd.f32 %v618_v12, %v537_v55  ;;  %v1085_v12 = vpop.permute.xlu0 %1084 }
 0x142   : > { %v530_v15 = vpop.f32.mrf.mxu1  ;;  %v621_v16 = vpop.f32.mrf.mxu3 }
 0x143   : > { %v2526_v17 = vpop.f32.mrf.mxu2  ;;  %v539_v8 = vadd.f32 %v530_v15, %v444_v4 }
 0x144   : > { %v504_v18 = vpop.f32.mrf.mxu0 }
 0x145   : > { %v2528_v19 = vadd.f32 %v504_v18, %v418_v2 }
 0x14a   : > { %v533_v21 = vpop.f32.mrf.mxu1  ;;  %v624_v22 = vpop.f32.mrf.mxu3 }
 0x14b   : > { %v541_v23 = vadd.f32 %v533_v21, %v447_v5  ;;  %v598_v24 = vpop.f32.mrf.mxu2  ;;  %v627_v5 = vadd.f32 %v592_v13, %v536_v1 }
 0x14c   : > { %v507_v25 = vpop.f32.mrf.mxu0 }
 0x14d   : > { %v540_v26 = vadd.f32 %v507_v25, %v421_v10  ;;  %v632_v31 = vadd.f32 %v624_v22, %v541_v23 }
 0x14f   : > { %v631_v33 = vadd.f32 %v598_v24, %v540_v26  ;;  %v630_v24 = vadd.f32 %v621_v16, %v539_v8 }
 0x152   : > { %v696_v34 = vpop.f32.mrf.mxu1  ;;  %v787_v43 = vpop.f32.mrf.mxu3 }
 0x153   : > { %v761_v35 = vpop.f32.mrf.mxu2  ;;  %v706_v6 = vadd.f32 %v696_v34, %v628_v3 }
 0x154   : > { %v670_v36 = vpop.f32.mrf.mxu0 }
 0x155   : > { %v705_v10 = vadd.f32 %v670_v36, %v627_v5  ;;  %v797_v21 = vadd.f32 %v787_v43, %v706_v6  ;;  %v1095_v6 = vpop.permute.xlu1 %1094 }
 0x157   : > { %v796_v25 = vadd.f32 %v761_v35, %v705_v10 }
 0x15a   : > { %v699_v37 = vpop.f32.mrf.mxu1  ;;  %v790_v50 = vpop.f32.mrf.mxu3 }
 0x15b   : > { %v2530_v38 = vpop.f32.mrf.mxu2  ;;  %v708_v58 = vadd.f32 %v699_v37, %v630_v24 }
 0x15c   : > { %v673_v41 = vpop.f32.mrf.mxu0 }
 0x15d   : > { %v799_v61 = vadd.f32 %v790_v50, %v708_v58 }
 0x162   : > { %v702_v44 = vpop.f32.mrf.mxu1  ;;  %v793_v56 = vpop.f32.mrf.mxu3 }
 0x163   : > { %v2532_v45 = vadd.f32 %v702_v44, %v632_v31  ;;  %v767_v47 = vpop.f32.mrf.mxu2 }
 0x164   : > { %v676_v46 = vpop.f32.mrf.mxu0 }
 0x165   : > { %v709_v48 = vadd.f32 %v676_v46, %v631_v33  ;;  %v1090_v46 = vpop.permute.xlu2 %1089 }
 0x167   : > { %v800_v49 = vadd.f32 %v767_v47, %v709_v48 }
 0x16a   : > { %v880_v51 = vpop.f32.mrf.mxu1  ;;  %v971_v22 = vpop.f32.mrf.mxu3 }
 0x16b   : > { %v890_v26 = vadd.f32 %v880_v51, %v797_v21  ;;  %v945_v60 = vpop.f32.mrf.mxu2 }
 0x16c   : > { %v854_v52 = vpop.f32.mrf.mxu0 }
 0x16d   : > { %v889_v59 = vadd.f32 %v854_v52, %v796_v25  ;;  %v981_v11 = vadd.f32 %v971_v22, %v890_v26 }
 0x16f   : > { %v980_v62 = vadd.f32 %v945_v60, %v889_v59 }
 0x172   : > { %v883_v63 = vpop.f32.mrf.mxu1  ;;  %v974_v36 = vpop.f32.mrf.mxu3 }
 0x173   : > { %v892_v31 = vadd.f32 %v883_v63, %v799_v61 }
 0x174   : > { %v857_v2 = vpop.f32.mrf.mxu0 }
 0x175   : > { %v983_v35 = vadd.f32 %v974_v36, %v892_v31 }
 0x17a   : > { %v886_v18 = vpop.f32.mrf.mxu1 }
 0x17c   : > { %v860_v23 = vpop.f32.mrf.mxu0 }
 0x17d   : > { %v2534_v57 = vadd.f32 %v860_v23, %v800_v49  ;;  %v629_v49 = vadd.f32 %v2526_v17, %v2528_v19  ;;  %v948_v17 = vpop.f32.mrf.mxu2 }
 0x17f   : > { %v707_v51 = vadd.f32 %v673_v41, %v629_v49  ;;  %v801_v41 = vadd.f32 %v793_v56, %v2532_v45 }
 0x181   : > { %v798_v52 = vadd.f32 %v2530_v38, %v707_v51  ;;  %v894_v63 = vadd.f32 %v886_v18, %v801_v41  ;;  %v977_v38 = vpop.f32.mrf.mxu3 }
 0x182   : > { %v1064_v14 = vpop.f32.mrf.mxu1 }
 0x183   : > { %v1074_v13 = vadd.f32 %v1064_v14, %v981_v11  ;;  %v891_v53 = vadd.f32 %v857_v2, %v798_v52  ;;  %v985_v3 = vadd.f32 %v977_v38, %v894_v63 }
 0x184   : > { %v1038_v15 = vpop.f32.mrf.mxu0 }
 0x185   : > { %v1098_v33 = vadd.f32 %v1085_v12, %v1074_v13  ;;  %v1073_v34 = vadd.f32 %v1038_v15, %v980_v62  ;;  %v982_v54 = vadd.f32 %v948_v17, %v891_v53  ;;  %v951_v8 = vpop.f32.mrf.mxu2  ;;  %v1774_v15 = vld [vmem:[%s2981_s4] sm:$0xf] }
 0x186   : > { %v984_v18 = vadd.f32 %v951_v8, %v2534_v57 }
 0x187   : > { %v2536_v43 = vmax.f32 %v1098_v33, 0.0  ;;  %v1097_v16 = vadd.f32 %v1085_v12, %v1073_v34 }
 0x189   : > { %v2538_v44 = vmax.f32 %v1097_v16, 0.0  ;;  %1551 = vrot.lane.b32.xlu0 %v2536_v43, %s2146_s15  ;;  %1142 = vrot.lane.b32.xlu1 %v2536_v43, %s2142_s11 }
 0x18a   : > { %v1067_v37 = vpop.f32.mrf.mxu1 }
 0x18b   : > { %v1076_v47 = vadd.f32 %v1067_v37, %v983_v35  ;;  %1545 = vrot.lane.b32.xlu2 %v2538_v44, %s2146_s15 }
 0x18c   : > { %v1041_v19 = vpop.f32.mrf.mxu0 }
 0x18d   : > { %v1100_v48 = vadd.f32 %v1090_v46, %v1076_v47  ;;  %v1075_v55 = vadd.f32 %v1041_v19, %v982_v54 }
 0x18f   : > { %v2548_v50 = vmax.f32 %v1100_v48, 0.0  ;;  %v1099_v1 = vadd.f32 %v1090_v46, %v1075_v55 }
 0x191   : > { %1116 = vrot.lane.b32.xlu1 %v2536_v43, %s2141_s10  ;;  %1136 = vrot.lane.b32.xlu0 %v2538_v44, %s2142_s11  ;;  %v2570_v4 = vmax.f32 %v1099_v1, 0.0 }
 0x192   : > { %v1070_v2 = vpop.f32.mrf.mxu1 }
 0x193   : > { %1144 = vrot.lane.b32.xlu2 %v2548_v50, %s2142_s11  ;;  %v1078_v5 = vadd.f32 %v1070_v2, %v985_v3 }
 0x194   : > { %v1044_v10 = vpop.f32.mrf.mxu0 }
 0x195   : > { %v1102_v45 = vadd.f32 %v1095_v6, %v1078_v5  ;;  %v1077_v21 = vadd.f32 %v1044_v10, %v984_v18 }
 0x197   : > { %v2578_v56 = vmax.f32 %v1102_v45, 0.0  ;;  %v1101_v22 = vadd.f32 %v1095_v6, %v1077_v21 }
 0x199   : > { %1267 = vrot.lane.b32.xlu1 %v2536_v43, %s2143_s12  ;;  %1110 = vrot.lane.b32.xlu0 %v2538_v44, %s2141_s10  ;;  %v2611_v23 = vmax.f32 %v1101_v22, 0.0 }
 0x19b   : > { %1118 = vrot.lane.b32.xlu2 %v2548_v50, %s2141_s10 }
 0x1a1   : > { %1344 = vrot.lane.b32.xlu1 %v2536_v43, %s2144_s13  ;;  %1261 = vrot.lane.b32.xlu0 %v2538_v44, %s2143_s12 }
 0x1a3   : > { %1269 = vrot.lane.b32.xlu2 %v2548_v50, %s2143_s12 }
 0x1a9   : > { %1338 = vrot.lane.b32.xlu0 %v2538_v44, %s2144_s13  ;;  %1138 = vrot.lane.b32.xlu1 %v2570_v4, %s2142_s11 }
 0x1ab   : > { %1346 = vrot.lane.b32.xlu2 %v2548_v50, %s2144_s13 }
 0x1b1   : > { %1120 = vrot.lane.b32.xlu0 %v2578_v56, %s2141_s10  ;;  %1112 = vrot.lane.b32.xlu1 %v2570_v4, %s2141_s10 }
 0x1b3   : > { %1553 = vrot.lane.b32.xlu2 %v2548_v50, %s2146_s15 }
 0x1b9   : > { %1271 = vrot.lane.b32.xlu0 %v2578_v56, %s2143_s12  ;;  %1263 = vrot.lane.b32.xlu1 %v2570_v4, %s2143_s12 }
 0x1bb   : > { %1146 = vrot.lane.b32.xlu2 %v2578_v56, %s2142_s11 }
 0x1c1   : > { %1348 = vrot.lane.b32.xlu0 %v2578_v56, %s2144_s13  ;;  %1340 = vrot.lane.b32.xlu1 %v2570_v4, %s2144_s13 }
 0x1c3   : > { %1476 = vrot.lane.b32.xlu2 %v2548_v50, %s2145_s14 }
 0x1c9   : > { %1555 = vrot.lane.b32.xlu0 %v2578_v56, %s2146_s15  ;;  %1547 = vrot.lane.b32.xlu1 %v2570_v4, %s2146_s15 }
 0x1cb   : > { %1707 = vrot.lane.b32.xlu2 %v2548_v50, %s2148_s17 }
 0x1d1   : > { %1468 = vrot.lane.b32.xlu0 %v2538_v44, %s2145_s14  ;;  %1478 = vrot.lane.b32.xlu1 %v2578_v56, %s2145_s14 }
 0x1d3   : > { %1699 = vrot.lane.b32.xlu2 %v2538_v44, %s2148_s17 }
 0x1d9   : > { %1709 = vrot.lane.b32.xlu0 %v2578_v56, %s2148_s17  ;;  %1140 = vrot.lane.b32.xlu1 %v2611_v23, %s2142_s11  ;;  %s2097_s11 = scalar_lea.hbm %s2982_s5, 16 }
 0x1db   : > { %1114 = vrot.lane.b32.xlu2 %v2611_v23, %s2141_s10 }
 0x1e1   : > { %1705 = vrot.lane.b32.xlu0 %v2536_v43, %s2148_s17  ;;  %1470 = vrot.lane.b32.xlu1 %v2570_v4, %s2145_s14 }
 0x1e3   : > { %1265 = vrot.lane.b32.xlu2 %v2611_v23, %s2143_s12 }
 0x1e5   : > { %v1546_v24 = vpop.permute.xlu2 %1545 }
 0x1e9   : > { %1472 = vrot.lane.b32.xlu0 %v2611_v23, %s2145_s14  ;;  %1474 = vrot.lane.b32.xlu1 %v2536_v43, %s2145_s14  ;;  %s215_s14 = sand.u32 1, %s2131_s19  }
 0x1eb   : > { %1342 = vrot.lane.b32.xlu2 %v2611_v23, %s2144_s13 }
 0x1ed   : > { %v2631_v25 = vpop.permute.xlu2 %1144 }
 0x1f1   : > { %1626 = vrot.lane.b32.xlu0 %v2611_v23, %s2147_s16  ;;  %1701 = vrot.lane.b32.xlu1 %v2570_v4, %s2148_s17 }
 0x1f3   : > { %1549 = vrot.lane.b32.xlu2 %v2611_v23, %s2146_s15  ;;  %s1869_s15 = sshll.u32 %s215_s14, 3 }
 0x1f4   : > { %s217_s8 = scalar_lea.vmem [#allocation2], %s1869_s15 }
 0x1f5   : > { %v2639_v26 = vpop.permute.xlu2 %1118  ;;  %s1803_s9 = sshll.u32 %s217_s8, 4  ;;  %s1804_s9 = int_to_ptr.vmem [resolvable:$true] %s1803_s9 }
 0x1f9   : > { %1622 = vrot.lane.b32.xlu0 %v2538_v44, %s2147_s16  ;;  %1632 = vrot.lane.b32.xlu1 %v2578_v56, %s2147_s16 }
 0x1fb   : > { %v1552_v57 = vpop.permute.xlu0 %1551  ;;  %v1143_v58 = vpop.permute.xlu1 %1142  ;;  %1703 = vrot.lane.b32.xlu2 %v2611_v23, %s2148_s17 }
 0x1fc   : > { %v2649_v59 = vsel %vm815_vm13, %v1546_v24, %v1552_v57  ;;  %v2653_v60 = vsel %vm815_vm13, %v1552_v57, %v1546_v24 }
 0x1fd   : > { %v2655_v11 = vpop.permute.xlu2 %1269 }
 0x201   : > { %1624 = vrot.lane.b32.xlu1 %v2570_v4, %s2147_s16 }
 0x203   : > { %v1117_v14 = vpop.permute.xlu1 %1116  ;;  %v1137_v12 = vpop.permute.xlu0 %1136  ;;  %1630 = vrot.lane.b32.xlu2 %v2548_v50, %s2147_s16 }
 0x204   : > { %v2663_v61 = vsel %vm308_vm9, %v1143_v58, %v1137_v12  ;;  %v2667_v62 = vsel %vm308_vm9, %v1137_v12, %v1143_v58 }
 0x205   : > { %v1347_v13 = vpop.permute.xlu2 %1346 }
 0x209   : > { %1628 = vrot.lane.b32.xlu1 %v2536_v43, %s2147_s16  ;;  %s2024_s16 = sshll.u32 %s2202_s22, 3  ;;  %s1790_s22 = scalar_lea.sflag [#allocation3], %s215_s14 }
 0x20a   : > { %s1801_s7 = scalar_lea.hbm %s2982_s5, %s2024_s16 }
 0x20b   : > { %v1268_v31 = vpop.permute.xlu1 %1267  ;;  %v1111_v33 = vpop.permute.xlu0 %1110  ;;  %1777 = vperm.xlu2 %2075, %v1774_v15   ;;  %s1805_s23 = sshll.u32 %s1801_s7, 4  ;;  %s1806_s23 = int_to_ptr.hbm [resolvable:$true] %s1805_s23 }
 0x20c   : > { %v2676_v34 = vsel %vm288_vm3, %v1111_v33, %v1117_v14  ;;  %v2680_v36 = vsel %vm288_vm3, %v1117_v14, %v1111_v33  ;;  %s2091_s25 = sshra.s32 %s1806_s23, 4  ;;  %s2092_s25 = int_to_ptr.hbm [resolvable:$true] %s2091_s25 }
 0x20d   : > { %v2682_v16 = vpop.permute.xlu2 %1553  ;;  %s2093_s26 = scalar_lea.hbm %s2092_s25, 8  ;;  %p2098_p0 = scmp.lt.s32.totalorder %s2092_s25, %s2982_s5 }
 0x20e   : > { %p2094_p11 = scmp.ne.s32.totalorder %s2092_s25, %s2093_s26  ;;  %p2099_p1 = scmp.lt.s32.totalorder %s2097_s11, %s2093_s26 }
 0x210   : > { %p2095_p12 = pnand %p2094_p11, %p2219_p5  ;;  %p2100_p2 = por %p2099_p1, %p2098_p0 }
 0x212   : > { %p2096_p13 = pneg %p2095_p12 }
 0x213   : > { %v1345_v35 = vpop.permute.xlu1 %1344  ;;  %v1262_v37 = vpop.permute.xlu0 %1261 }
 0x214   : > { %v2686_v46 = vsel %vm462_vm8, %v1262_v37, %v1268_v31  ;;  %v2690_v47 = vsel %vm462_vm8, %v1268_v31, %v1262_v37  ;;  %p2101_p3 = pnand %p2100_p2, %p2096_p13 }
 0x215   : > { %v1147_v48 = vpop.permute.xlu2 %1146 }
 0x21b   : > { %v1339_v49 = vpop.permute.xlu0 %1338  ;;  %v1139_v51 = vpop.permute.xlu1 %1138 }
 0x21c   : > { %v1350_v58 = vsel %vm555_vm10, %v1339_v49, %v1345_v35  ;;  %v1353_v14 = vsel %vm555_vm10, %v1345_v35, %v1339_v49  ;;  %v1152_v35 = vsel %vm308_vm9, %v2631_v25, %v1139_v51 }
 0x21d   : > { %v2692_v52 = vpop.permute.xlu2 %1476  ;;  %v1356_v15 = vmul.f32 %v2277_v28, %v1353_v14  ;;  %v1357_v31 = vmul.f32 %v2285_v30, %v1350_v58 }
 0x223   : > { %v1121_v53 = vpop.permute.xlu0 %1120  ;;  %v1113_v17 = vpop.permute.xlu1 %1112 }
 0x225   : > { %v2694_v19 = vpop.permute.xlu2 %1707 }
 0x22b   : > { %v2696_v54 = vpop.permute.xlu0 %1271  ;;  %v2698_v41 = vpop.permute.xlu1 %1263 }
 0x22d   : > { %v2700_v55 = vpop.permute.xlu2 %1699 }
 0x233   : > { %v1349_v63 = vpop.permute.xlu0 %1348  ;;  %v1341_v38 = vpop.permute.xlu1 %1340 }
 0x234   : > { %v1351_v10 = vsel %vm555_vm10, %v1341_v38, %v1347_v13  ;;  %v1354_v18 = vsel %vm555_vm10, %v1347_v13, %v1341_v38  ;;  %v1988_v38 = vld [vmem:[%s2980_s3 + $0xc] sm:$0xf] }
 0x235   : > { %v1115_v1 = vpop.permute.xlu2 %1114  ;;  %v1358_v12 = vmul.f32 %v2277_v28, %v1354_v18  ;;  %v1359_v13 = vmul.f32 %v2285_v30, %v1351_v10  ;;  %v1156_v10 = vmul.f32 %v2274_v27, %v1152_v35  ;;  %v1279_v35 = vmul.f32 %v2690_v47, %v2312_v42 }
 0x236   : > { %v1124_v18 = vsel %vm288_vm3, %v1115_v1, %v1121_v53 }
 0x23b   : > { %v2702_v2 = vpop.permute.xlu0 %1555  ;;  %v2704_v3 = vpop.permute.xlu1 %1547 }
 0x23d   : > { %v1266_v5 = vpop.permute.xlu2 %1265 }
 0x243   : > { %v2706_v6 = vpop.permute.xlu0 %1468  ;;  %v2708_v45 = vpop.permute.xlu1 %1478 }
 0x245   : > { %v1343_v8 = vpop.permute.xlu2 %1342 }
 0x246   : > { %v1352_v21 = vsel %vm555_vm10, %v1343_v8, %v1349_v63  ;;  %v1355_v22 = vsel %vm555_vm10, %v1349_v63, %v1343_v8 }
 0x247   : > { %v1360_v24 = vmul.f32 %v2277_v28, %v1355_v22  ;;  %v1361_v57 = vmul.f32 %v2285_v30, %v1352_v21  ;;  %v1974_v21 = vld [vmem:[%s2980_s3 + $0x4] sm:$0xf]  ;;  %v1154_v22 = vmul.f32 %v2274_v27, %v2663_v61 }
 0x249   : > { %1989 = vmatpush.msk.msrb.mxu0 %vm323_vm5, %v1360_v24  ;;  %1991 = vmatpush.msk.msrb.mxu1 %vm323_vm5, %v1361_v57  ;;  %v1123_v24 = vsel %vm288_vm3, %v1113_v17, %v2639_v26  ;;  %v1127_v57 = vsel %vm288_vm3, %v1121_v53, %v1115_v1  ;;  %v1275_v53 = vsel %vm462_vm8, %v1266_v5, %v2696_v54 }
 0x24a   : > { %v1131_v61 = vmul.f32 %v2285_v30, %v1123_v24  ;;  %v1132_v14 = vmul.f32 %v1127_v57, %v2282_v29  ;;  %v1278_v1 = vsel %vm462_vm8, %v2696_v54, %v1266_v5  ;;  %v1109_v54 = vld [vmem:[%s2980_s3] sm:$0xf] }
 0x24b   : > { %v2730_v33 = vpop.permute.xlu0 %1709  ;;  %1385 = vmatpush.msrb.mxu0 %v1358_v12  ;;  %1405 = vmatpush.msrb.mxu1 %v1359_v13  ;;  %v1141_v37 = vpop.permute.xlu1 %1140  ;;  %v1284_v12 = vmul.f32 %v2305_v40, %v1275_v53 }
 0x24c   : > { %v1150_v49 = vsel %vm308_vm9, %v1141_v37, %v1147_v48  ;;  %v1153_v63 = vsel %vm308_vm9, %v1147_v48, %v1141_v37  ;;  %v1149_v48 = vsel %vm308_vm9, %v1139_v51, %v2631_v25  ;;  %v1133_v25 = vmul.f32 %v2285_v30, %v1124_v18 }
 0x24d   : > { %v1158_v8 = vmul.f32 %v2274_v27, %v1153_v63  ;;  %1386 = vmatpush.msrb.mxu0 %v1356_v15  ;;  %1406 = vmatpush.msrb.mxu1 %v1357_v31  ;;  %v1126_v51 = vsel %vm288_vm3, %v2639_v26, %v1113_v17  ;;  %v1274_v17 = vsel %vm462_vm8, %v2698_v41, %v2655_v11  ;;  %v1550_v5 = vpop.permute.xlu2 %1549 }
 0x24e   : > { %1977 = vmatpush.msk.msra.mxu3 %vm323_vm5, %v1150_v49  ;;  %1992 = vmatmul.msk.f32.vlgmr.msrb.gmra.mxu1 %vm1160_vm0, %v1988_v38  ;;  %v1130_v26 = vmul.f32 %v1126_v51, %v2282_v29  ;;  %v1282_v13 = vmul.f32 %v2305_v40, %v1274_v17  ;;  %v1283_v15 = vmul.f32 %v1278_v1, %v2312_v42  ;;  %v2003_v1 = vld [vmem:[%s2980_s3 + $0x18] sm:$0xf] }
 0x24f   : > { %1975 = vmatpush.msk.msra.mxu2 %vm323_vm5, %v1158_v8  ;;  %1990 = vmatmul.msk.f32.vlgmr.msrb.gmra.mxu0 %vm1160_vm0, %v1988_v38  ;;  %v1562_v47 = vsel %vm815_vm13, %v2702_v2, %v1550_v5 }
 0x250   : > { %1204 = vmatpush.msra.mxu3 %v1149_v48 }
 0x251   : > { %1184 = vmatpush.msra.mxu2 %v1156_v10  ;;  %v1983_v10 = vld [vmem:[%s2980_s3 + $0x8] sm:$0xf] }
 0x252   : > { %1205 = vmatpush.msra.mxu3 %v2667_v62  ;;  %v1129_v62 = vmul.f32 %v2285_v30, %v2676_v34  ;;  %v1128_v30 = vmul.f32 %v2680_v36, %v2282_v29  ;;  %v1277_v34 = vsel %vm462_vm8, %v2655_v11, %v2698_v41  ;;  %v1280_v29 = vmul.f32 %v2305_v40, %v2686_v46 }
 0x253   : > { %1978 = vmatmul.msk.f32.vlgmr.msra.gmra.mxu3 %vm1160_vm0, %v1974_v21  ;;  %v2769_v58 = vpop.permute.xlu0 %1705  ;;  %1185 = vmatpush.msra.mxu2 %v1154_v22  ;;  %v1471_v27 = vpop.permute.xlu1 %1470  ;;  %v1281_v36 = vmul.f32 %v1277_v34, %v2312_v42  ;;  %v1564_v22 = vmul.f32 %v2653_v60, %v2396_v9 }
 0x254   : > { %1981 = vmatpush.msk.msrb.mxu3 %vm323_vm5, %v1133_v25  ;;  %1976 = vmatmul.msk.f32.vlgmr.msra.gmra.mxu2 %vm1160_vm0, %v1974_v21  ;;  %v1481_v31 = vsel %vm724_vm11, %v1471_v27, %v2692_v52  ;;  %v1484_v38 = vsel %vm724_vm11, %v2692_v52, %v1471_v27  ;;  %v1998_v21 = vld [vmem:[%s2980_s3 + $0x14] sm:$0xf] }
 0x255   : > { %1979 = vmatpush.msk.msrb.mxu2 %vm323_vm5, %v1132_v14  ;;  %v1488_v42 = vmul.f32 %v2298_v39, %v1481_v31 }
 0x256   : > { %1253 = vmatpush.msrb.mxu3 %v1131_v61 }
 0x257   : > { %1233 = vmatpush.msrb.mxu2 %v1130_v26 }
 0x258   : > { %1254 = vmatpush.msrb.mxu3 %v1129_v62 }
 0x259   : > { %1234 = vmatpush.msrb.mxu2 %v1128_v30 }
 0x25a   : > { %1986 = vmatpush.msk.msra.mxu3 %vm323_vm5, %v1284_v12 }
 0x25b   : > { %1984 = vmatpush.msk.msra.mxu2 %vm323_vm5, %v1283_v15  ;;  %v1473_v11 = vpop.permute.xlu0 %1472  ;;  %v1475_v41 = vpop.permute.xlu1 %1474  ;;  %1982 = vmatmul.msk.f32.vlgmr.msrb.gmra.mxu3 %vm1160_vm0, %v1109_v54  ;;  %v2008_v15 = vld [vmem:[%s2980_s3 + $0x1c] sm:$0xf] }
 0x25c   : > { %1328 = vmatpush.msra.mxu3 %v1282_v13  ;;  %v1482_v37 = vsel %vm724_vm11, %v1473_v11, %v2708_v45  ;;  %v1485_v46 = vsel %vm724_vm11, %v2708_v45, %v1473_v11  ;;  %v1480_v8 = vsel %vm724_vm11, %v2706_v6, %v1475_v41  ;;  %1980 = vmatmul.msk.f32.vlgmr.msrb.gmra.mxu2 %vm1160_vm0, %v1109_v54 }
 0x25d   : > { %v1490_v49 = vmul.f32 %v2298_v39, %v1482_v37  ;;  %v1491_v63 = vmul.f32 %v2305_v40, %v1485_v46  ;;  %1308 = vmatpush.msra.mxu2 %v1281_v36  ;;  %v1483_v52 = vsel %vm724_vm11, %v1475_v41, %v2706_v6  ;;  %v1486_v45 = vmul.f32 %v2298_v39, %v1480_v8 }
 0x25e   : > { %1329 = vmatpush.msra.mxu3 %v1280_v29  ;;  %v1561_v6 = vsel %vm815_vm13, %v2682_v16, %v2704_v3  ;;  %v1487_v18 = vmul.f32 %v2305_v40, %v1483_v52 }
 0x25f   : > { %1309 = vmatpush.msra.mxu2 %v1279_v35  ;;  %1999 = vmatpush.msk.msra.mxu0 %vm323_vm5, %v1490_v49 }
 0x260   : > { %1996 = vmatpush.msk.msrb.mxu3 %vm323_vm5, %v2578_v56  ;;  %v1489_v56 = vmul.f32 %v2305_v40, %v1484_v38  ;;  %2001 = vmatpush.msk.msra.mxu1 %vm323_vm5, %v1491_v63 }
 0x261   : > { %1994 = vmatpush.msk.msrb.mxu2 %vm323_vm5, %v2611_v23  ;;  %1515 = vmatpush.msra.mxu0 %v1488_v42  ;;  %v1568_v23 = vmul.f32 %v1562_v47, %v2396_v9 }
 0x262   : > { %1458 = vmatpush.msrb.mxu3 %v2548_v50  ;;  %v1559_v50 = vsel %vm815_vm13, %v1550_v5, %v2702_v2  ;;  %1535 = vmatpush.msra.mxu1 %v1489_v56  ;;  %v1558_v2 = vsel %vm815_vm13, %v2704_v3, %v2682_v16  ;;  %v1563_v3 = vmul.f32 %v2277_v28, %v2649_v59 }
 0x263   : > { %1438 = vmatpush.msrb.mxu2 %v2570_v4  ;;  %1516 = vmatpush.msra.mxu0 %v1486_v45  ;;  %v1702_v48 = vpop.permute.xlu1 %1701  ;;  %v1567_v40 = vmul.f32 %v2277_v28, %v1559_v50  ;;  %v1704_v4 = vpop.permute.xlu2 %1703  ;;  %v1565_v16 = vmul.f32 %v2277_v28, %v1558_v2  ;;  %v1714_v28 = vsel %vm999_vm15, %v2769_v58, %v2700_v55 }
 0x264   : > { %1459 = vmatpush.msrb.mxu3 %v2536_v43  ;;  %v1566_v43 = vmul.f32 %v1561_v6, %v2396_v9  ;;  %1536 = vmatpush.msra.mxu1 %v1487_v18  ;;  %v1993_v9 = vld [vmem:[%s2980_s3 + $0x10] sm:$0xf]  ;;  %v1713_v60 = vsel %vm999_vm15, %v1704_v4, %v2730_v33  ;;  %v1715_v24 = vsel %vm999_vm15, %v2694_v19, %v1702_v48  ;;  %v1627_v25 = vpop.permute.xlu0 %1626 }
 0x265   : > { %1987 = vmatmul.msk.f32.vlgmr.msra.gmra.mxu3 %vm1160_vm0, %v1983_v10  ;;  %1439 = vmatpush.msrb.mxu2 %v2538_v44  ;;  %v1716_v44 = vsel %vm999_vm15, %v2730_v33, %v1704_v4  ;;  %v1712_v59 = vsel %vm999_vm15, %v1702_v48, %v2694_v19  ;;  %v1721_v61 = vmul.f32 %v2298_v39, %v1713_v60 }
 0x266   : > { %2006 = vmatpush.msk.msra.mxu3 %vm323_vm5, %v1568_v23  ;;  %1985 = vmatmul.msk.f32.vlgmr.msra.gmra.mxu2 %vm1160_vm0, %v1983_v10  ;;  %v1722_v57 = vmul.f32 %v1716_v44, %v2447_v32  ;;  %v1720_v14 = vmul.f32 %v1715_v24, %v2447_v32  ;;  %v1711_v19 = vsel %vm999_vm15, %v2700_v55, %v2769_v58 }
 0x267   : > { %2002 = vmatmul.msk.f32.vlgmr.msra.gmra.mxu1 %vm1160_vm0, %v1998_v21  ;;  %2004 = vmatpush.msk.msra.mxu2 %vm323_vm5, %v1567_v40  ;;  %v1718_v62 = vmul.f32 %v1714_v28, %v2447_v32  ;;  %v1719_v26 = vmul.f32 %v2298_v39, %v1712_v59  ;;  %v1717_v17 = vmul.f32 %v2298_v39, %v1711_v19  ;;  %v2013_v39 = vld [vmem:[%s2980_s3 + $0x20] sm:$0xf] }
 0x268   : > { %1612 = vmatpush.msra.mxu3 %v1566_v43  ;;  %2000 = vmatmul.msk.f32.vlgmr.msra.gmra.mxu0 %vm1160_vm0, %v1998_v21 }
 0x269   : > { %1592 = vmatpush.msra.mxu2 %v1565_v16 }
 0x26a   : > { %1613 = vmatpush.msra.mxu3 %v1564_v22 }
 0x26b   : > { %1593 = vmatpush.msra.mxu2 %v1563_v3  ;;  %v1633_v51 = vpop.permute.xlu1 %1632  ;;  %v1631_v55 = vpop.permute.xlu2 %1630 }
 0x26c   : > { %v1636_v33 = vsel %vm908_vm14, %v1627_v25, %v1633_v51  ;;  %v1639_v27 = vsel %vm908_vm14, %v1633_v51, %v1627_v25  ;;  %v1623_v34 = vpop.permute.xlu0 %1622 }
 0x26d   : > { %1997 = vmatmul.msk.f32.vlgmr.msrb.gmra.mxu3 %vm1160_vm0, %v1993_v9  ;;  %v1645_v53 = vmul.f32 %v2391_v7, %v1639_v27  ;;  %2009 = vmatpush.msk.msrb.mxu0 %vm323_vm5, %v1636_v33 }
 0x26e   : > { %2016 = vmatpush.msk.msrb.mxu3 %vm323_vm5, %v1722_v57  ;;  %1995 = vmatmul.msk.f32.vlgmr.msrb.gmra.mxu2 %vm1160_vm0, %v1993_v9 }
 0x26f   : > { %2014 = vmatpush.msk.msrb.mxu2 %vm323_vm5, %v1721_v61  ;;  %2011 = vmatpush.msk.msrb.mxu1 %vm323_vm5, %v1645_v53 }
 0x270   : > { %1766 = vmatpush.msrb.mxu3 %v1720_v14 }
 0x271   : > { %1746 = vmatpush.msrb.mxu2 %v1719_v26 }
 0x272   : > { %1767 = vmatpush.msrb.mxu3 %v1718_v62 }
 0x273   : > { %1747 = vmatpush.msrb.mxu2 %v1717_v17  ;;  %v1625_v58 = vpop.permute.xlu1 %1624  ;;  %v1778_v3 = vpop.permute.xlu2 %1777 }
 0x274   : > { %v1638_v32 = vsel %vm908_vm14, %v1631_v55, %v1625_v58  ;;  %v1635_v12 = vsel %vm908_vm14, %v1625_v58, %v1631_v55 }
 0x275   : > { %2007 = vmatmul.msk.f32.vlgmr.msra.gmra.mxu3 %vm1160_vm0, %v2003_v1  ;;  %v1643_v30 = vmul.f32 %v2391_v7, %v1638_v32  ;;  %1669 = vmatpush.msrb.mxu0 %v1635_v12 }
 0x276   : > { %2005 = vmatmul.msk.f32.vlgmr.msra.gmra.mxu2 %vm1160_vm0, %v2003_v1 }
 0x277   : > { %1689 = vmatpush.msrb.mxu1 %v1643_v30 }
 0x27b   : > { %v1629_v13 = vpop.permute.xlu1 %1628 }
 0x27c   : > { %v1637_v54 = vsel %vm908_vm14, %v1629_v13, %v1623_v34  ;;  %v1634_v5 = vsel %vm908_vm14, %v1623_v34, %v1629_v13 }
 0x27d   : > { %2017 = vmatmul.msk.f32.vlgmr.msrb.gmra.mxu3 %vm1160_vm0, %v2013_v39  ;;  %v1641_v29 = vmul.f32 %v2391_v7, %v1637_v54  ;;  %1670 = vmatpush.msrb.mxu0 %v1634_v5 }
 0x27e   : > { %2015 = vmatmul.msk.f32.vlgmr.msrb.gmra.mxu2 %vm1160_vm0, %v2013_v39  ;;  %2010 = vmatmul.msk.f32.vlgmr.msrb.gmra.mxu0 %vm1160_vm0, %v2008_v15 }
 0x27f   : > { %1690 = vmatpush.msrb.mxu1 %v1641_v29 }
 0x280   : > { %2012 = vmatmul.msk.f32.vlgmr.msrb.gmra.mxu1 %vm1160_vm0, %v2008_v15 }
 0x2cb   : > { %v1408_v35 = vpop.f32.mrf.mxu1 }
 0x2cc   : > { %v1388_v49 = vpop.f32.mrf.mxu0 }
 0x2d6   : > { %v1207_v36 = vpop.f32.mrf.mxu3 }
 0x2d7   : > { %v1187_v11 = vpop.f32.mrf.mxu2 }
 0x2de   : > { %v1256_v41 = vpop.f32.mrf.mxu3 }
 0x2df   : > { %v1236_v31 = vpop.f32.mrf.mxu2  ;;  %v1257_v20 = vadd.f32 %v1256_v41, %v1207_v36 }
 0x2e0   : > { %v1237_v7 = vadd.f32 %v1236_v31, %v1187_v11 }
 0x2e4   : > { %v1538_v52 = vpop.f32.mrf.mxu1 }
 0x2e5   : > { %v1518_v56 = vpop.f32.mrf.mxu0 }
 0x2e8   : > { %v1331_v37 = vpop.f32.mrf.mxu3 }
 0x2e9   : > { %v1311_v46 = vpop.f32.mrf.mxu2  ;;  %v1335_v38 = vadd.f32 %v1331_v37, %v1257_v20 }
 0x2ea   : > { %v1334_v42 = vadd.f32 %v1311_v46, %v1237_v7 }
 0x2eb   : > { %v1412_v47 = vadd.f32 %v1408_v35, %v1335_v38 }
 0x2ec   : > { %v1411_v45 = vadd.f32 %v1388_v49, %v1334_v42 }
 0x2f0   : > { %v1461_v63 = vpop.f32.mrf.mxu3 }
 0x2f1   : > { %v1441_v8 = vpop.f32.mrf.mxu2  ;;  %v1465_v10 = vadd.f32 %v1461_v63, %v1412_v47 }
 0x2f2   : > { %v1464_v50 = vadd.f32 %v1441_v8, %v1411_v45 }
 0x2f3   : > { %v1542_v18 = vadd.f32 %v1538_v52, %v1465_v10 }
 0x2f4   : > { %v1541_v48 = vadd.f32 %v1518_v56, %v1464_v50 }
 0x2f8   : > { %v1615_v6 = vpop.f32.mrf.mxu3 }
 0x2f9   : > { %v1595_v23 = vpop.f32.mrf.mxu2  ;;  %v1619_v21 = vadd.f32 %v1615_v6, %v1542_v18 }
 0x2fa   : > { %v1618_v40 = vadd.f32 %v1595_v23, %v1541_v48 }
 0x2fb   : > { %v1672_v2 = vpop.f32.mrf.mxu0 }
 0x2fc   : > { %v1695_v16 = vadd.f32 %v1672_v2, %v1618_v40 }
 0x2fd   : > { %v1692_v43 = vpop.f32.mrf.mxu1 }
 0x2fe   : > { %v1696_v4 = vadd.f32 %v1692_v43, %v1619_v21 }
 0x300   : > { %v1769_v22 = vpop.f32.mrf.mxu3 }
 0x301   : > { %v1773_v44 = vadd.f32 %v1769_v22, %v1696_v4  ;;  %v1749_v9 = vpop.f32.mrf.mxu2 }
 0x302   : > { %v1772_v60 = vadd.f32 %v1749_v9, %v1695_v16 }
 0x303   : > { %v1781_v24 = vadd.f32 %v1778_v3, %v1773_v44 }
 0x304   : > { %v1780_v57 = vadd.f32 %v1778_v3, %v1772_v60 }
 0x305   : > { %v1784_v25 = vrot.slane %v1781_v24, 4 }
 0x307   : > { %v1785_v51 = vsel %vm323_vm5, %v1780_v57, %v1784_v25 }
 0x308   : > { %v1787_v28 = vadd.f32 %v1785_v51, %v2234_v0 }
 0x30a   : > { %1788 = vst [vmem:[%s217_s8] sm:$0xff] %v1787_v28 }
 0x30b   : > { %2104 = shalt.err (!%p2101_p3)
}
 0x30c   : > { %2025 = dma.vmem_to_hbm [thread:$0]  (%p2219_p5), %s1804_s9, 128, %s1806_s23, %s1790_s22  }
 0x30d PF: > { %p2031_p4 = scmp.ge.s32.totalorder %s2139_s21, 2  ;;  %s1817_s14 = sand.u32 1, %s2127_s18  }
 0x30e   : > { %s1818_s15 = scalar_lea.sflag [#allocation3], %s1817_s14 }
 0x30f   : > { %p2028_p7 = pnand %p2031_p4, %p2223_p6 }
 0x311   : > { %p2029_p8 = pneg %p2028_p7 }
 0x313   : > { %2122 = dma.done.wait (%p2029_p8), %s1818_s15, 128  }
 0x314   : > { %2124 = vsyncadd (%p2029_p8), %s1818_s15, 4294967168  ;;  %p15_p9 = scmp.ge.s32.totalorder %s2206_s24, 4   ;;  %s2985_s18 = smov %s2131_s19 }
 0x315   : > { %s2986_s19 = smov %s2135_s20  ;;  %s2987_s20 = smov %s2217_s27 }
 0x316   : > { %s2988_s21 = smov %s2206_s24  ;;  %17 = sbr.rel (!%p15_p9) target bundleno = 3 (0x3), region = 91 }
 0x31b   :  { %1824 = vsyncpa [#allocation3], 1 }
 0x31c   :  { %1826 = vsyncpa [#allocation3 + $0x1], 1 }

</bundles_post_ra>
